<compile_context>
chip_gen: v7x
topology: tpu7x:2x2x1
jax: 0.10.0
libtpu: 0.0.40
codegen_flags: <defaults>
</compile_context>

<pallas_src>
import math

import jax
import jax.numpy as jnp
from jax.experimental import pallas as pl
from jax.experimental.pallas import tpu as pltpu


def _fused_history_target_attention_kernel(q_ref, kv_ref, wq_ref, bq_ref, wk_ref, bk_ref,
                                           wv_ref, bv_ref, rt_ref, r_ref,
                                           w_out_ref, vec_out_ref):
    Bt, D = q_ref.shape            # batch tile, feature dim
    BS = kv_ref.shape[0]           # Bt * S (history rows, b-major / s-minor)
    S = BS // Bt
    H = rt_ref.shape[1]            # num heads

    # --- projections: bf16 operands, f32 accumulation, one large-M MXU matmul each ---
    q16 = q_ref[...].astype(jnp.bfloat16)
    kv16 = kv_ref[...].astype(jnp.bfloat16)
    Q = jnp.dot(q16, wq_ref[...], preferred_element_type=jnp.float32) + bq_ref[...]   # (Bt, D) (scale folded)
    K = jnp.dot(kv16, wk_ref[...], preferred_element_type=jnp.float32) + bk_ref[...]  # (Bt*S, D)
    V = jnp.dot(kv16, wv_ref[...], preferred_element_type=jnp.float32) + bv_ref[...]  # (Bt*S, D)

    # --- scores[b,s,h] = sum_d Q[b,d]*K[b,s,d]*R[h,d] ---
    # broadcast Q over the S history rows (VPU), per-head sum via ONE (Bt*S,D)x(D,H) MXU matmul.
    Qb = jnp.broadcast_to(Q[:, None, :], (Bt, S, D)).reshape(BS, D)                   # (Bt*S, D)
    P = K * Qb                                                                         # (Bt*S, D) VPU
    scores = jnp.dot(P, rt_ref[...], preferred_element_type=jnp.float32)               # (Bt*S, H)

    # --- softmax over the S history positions (segment of S rows per batch row) ---
    s3 = scores.reshape(Bt, S, H)
    m = jnp.max(s3, axis=1, keepdims=True)
    e = jnp.exp(s3 - m)
    denom = jnp.sum(e, axis=1, keepdims=True)
    w3 = e / denom                            # exact divide: user-visible weights sum to 1

    # --- attention-weighted sum of V ---
    # expand head weights to features with one (Bt*S,H)x(H,D) matmul against R (R is 0/1, exact),
    # fused VPU multiply with V, then a sublane reduce over S.
    wexp = jnp.dot(w3.reshape(BS, H), r_ref[...], preferred_element_type=jnp.float32)  # (Bt*S, D)
    vec = jnp.sum((wexp * V).reshape(Bt, S, D), axis=1)                                 # (Bt, D)

    w_out_ref[...] = w3.astype(w_out_ref.dtype)       # (Bt, S, H)
    vec_out_ref[...] = vec.astype(vec_out_ref.dtype)  # (Bt, D) slice of the (B, 3D) output


def _prepare_fused_params(params, num_heads):
    """Stack the three towers' params, fold 1/sqrt(dh) into the query projection, and
    pre-cast the matmul weights to bf16 (biases stay f32, added after the f32-accumulated dot)."""
    towers = [params["qoe"], params["chonghe"], params["fufei"]]
    D = towers[0]["wq"].shape[0]
    dh = D // num_heads
    scale = 1.0 / math.sqrt(dh)
    wq = jnp.stack([(p["wq"] * scale).astype(jnp.bfloat16) for p in towers], axis=0)  # (3, D, D)
    bq = jnp.stack([(p["bq"] * scale).astype(jnp.float32) for p in towers], axis=0)   # (3, 1, D)
    wk = jnp.stack([p["wk"].astype(jnp.bfloat16) for p in towers], axis=0)            # (3, D, D)
    bk = jnp.stack([p["bk"].astype(jnp.float32) for p in towers], axis=0)             # (3, 1, D)
    wv = jnp.stack([p["wv"].astype(jnp.bfloat16) for p in towers], axis=0)            # (3, D, D)
    bv = jnp.stack([p["bv"].astype(jnp.float32) for p in towers], axis=0)             # (3, 1, D)
    return wq, bq, wk, bk, wv, bv


def _pick_b_tile(B, S, D, budget_bytes=24 << 20):
    """Batch-tile from a conservative VMEM budget (~24 MiB: double-buffered history block plus
    the K/V/P/wexp f32 intermediates ~ 8 f32 slabs of (Bt*S, D)); multiple of 8, capped at 256.
    The same budget is safe on v7x (64 MiB physical / 32 MiB default scoped VMEM)."""
    per_row = 8 * S * D * 4
    bt = budget_bytes // max(per_row, 1)
    bt = max(8, min(256, (bt // 8) * 8))
    return int(min(bt, B))


def history_target_attention_layer(se_user_history_pay_QOE_vec,
                                   se_user_history_pay_CHONGHE_vec,
                                   se_user_history_pay_FUFEI_vec,
                                   se_target_QOE_vec,
                                   se_target_CHONGHE_vec,
                                   se_target_FUFEI_vec,
                                   params, num_heads, *,
                                   b_tile=None, vmem_limit_mb=32):
    B, S, D = se_user_history_pay_QOE_vec.shape
    assert D % num_heads == 0, "feature_dim must be divisible by num_heads"
    H = num_heads
    dh = D // H

    if b_tile is None:
        b_tile = _pick_b_tile(B, S, D)
    b_tile = int(min(b_tile, B))
    n_b = pl.cdiv(B, b_tile)

    # Stack towers on a leading axis; flatten histories to (3, B*S, D) so the kernel gets a
    # plain 2-D (Bt*S, D) block (no in-kernel reshape of the streamed history).
    targets = jnp.stack([se_target_QOE_vec, se_target_CHONGHE_vec, se_target_FUFEI_vec], axis=0)
    hist_flat = jnp.stack([se_user_history_pay_QOE_vec.reshape(B * S, D),
                           se_user_history_pay_CHONGHE_vec.reshape(B * S, D),
                           se_user_history_pay_FUFEI_vec.reshape(B * S, D)], axis=0)

    wq, bq, wk, bk, wv, bv = _prepare_fused_params(params, num_heads)

    # Static head-ownership matrices, built once on the host: R[h, d] = 1 iff d // dh == h.
    r_hd = (jnp.arange(D, dtype=jnp.int32)[None, :] // dh
            == jnp.arange(H, dtype=jnp.int32)[:, None]).astype(jnp.float32)   # (H, D)
    rt_dh = r_hd.T                                                              # (D, H)

    w_all, vec = pl.pallas_call(
        _fused_history_target_attention_kernel,
        grid=(3, n_b),   # tower outermost (weights resident across inner batch loop)
        in_specs=[
            pl.BlockSpec((None, b_tile, D), lambda t, b: (t, b, 0)),          # targets
            # History is the dominant HBM stream; add pipeline_mode=pl.Buffered(3) here if an
            # xprof trace shows exposed DMA (costs one extra tile of VMEM — recheck v7x budget).
            pl.BlockSpec((None, b_tile * S, D), lambda t, b: (t, b, 0)),      # histories (flattened)
            pl.BlockSpec((None, D, D), lambda t, b: (t, 0, 0)),               # wq (bf16, scale folded)
            pl.BlockSpec((None, 1, D), lambda t, b: (t, 0, 0)),               # bq (scale folded)
            pl.BlockSpec((None, D, D), lambda t, b: (t, 0, 0)),               # wk (bf16)
            pl.BlockSpec((None, 1, D), lambda t, b: (t, 0, 0)),               # bk
            pl.BlockSpec((None, D, D), lambda t, b: (t, 0, 0)),               # wv (bf16)
            pl.BlockSpec((None, 1, D), lambda t, b: (t, 0, 0)),               # bv
            pl.BlockSpec((D, H), lambda t, b: (0, 0)),                        # R^T (shared)
            pl.BlockSpec((H, D), lambda t, b: (0, 0)),                        # R   (shared)
        ],
        out_specs=(
            pl.BlockSpec((None, b_tile, S, H), lambda t, b: (t, b, 0, 0)),    # attention weights
            pl.BlockSpec((b_tile, D), lambda t, b: (b, t)),                   # (B, 3D) concat vec
        ),
        out_shape=(jax.ShapeDtypeStruct((3, B, S, H), jnp.float32),
                   jax.ShapeDtypeStruct((B, 3 * D), jnp.float32)),
        compiler_params=pltpu.CompilerParams(
            dimension_semantics=("arbitrary", "parallel"),   # batch tiles are the core-parallel axis
            vmem_limit_bytes=vmem_limit_mb << 20),
    )(targets, hist_flat, wq, bq, wk, bk, wv, bv, rt_dh, r_hd)

    # Reference layout for the per-tower weights is (B, H, S); the kernel stores its natural
    # (B, S, H) layout and this tiny transpose stays outside the kernel (plain XLA).
    w_qoe = jnp.transpose(w_all[0], (0, 2, 1))
    w_ch = jnp.transpose(w_all[1], (0, 2, 1))
    w_fu = jnp.transpose(w_all[2], (0, 2, 1))
    return vec, w_qoe, w_ch, w_fu


def _init_attention_params(key, D):
    ks = jax.random.split(key, 3)
    scale = 1.0 / math.sqrt(D)
    return {
        "wq": jax.random.normal(ks[0], (D, D), jnp.float32) * scale,
        "bq": jnp.zeros((1, D), jnp.float32),
        "wk": jax.random.normal(ks[1], (D, D), jnp.float32) * scale,
        "bk": jnp.zeros((1, D), jnp.float32),
        "wv": jax.random.normal(ks[2], (D, D), jnp.float32) * scale,
        "bv": jnp.zeros((1, D), jnp.float32),
    }


def _reference_tower(q, kv, p, H):
    """Pure-JAX f32 reference for one MultiHeadHistory_TargetAttention forward."""
    B, S, D = kv.shape
    dh = D // H
    Q = q @ p["wq"] + p["bq"]                     # (B, D)
    K = kv @ p["wk"] + p["bk"]                    # (B, S, D)
    V = kv @ p["wv"] + p["bv"]                    # (B, S, D)
    Qh = Q.reshape(B, H, dh)
    Kh = K.reshape(B, S, H, dh)
    Vh = V.reshape(B, S, H, dh)
    scores = jnp.einsum('bhd,bshd->bhs', Qh, Kh) / jnp.sqrt(jnp.float32(dh))
    w = jax.nn.softmax(scores, axis=-1)           # (B, H, S)
    out = jnp.einsum('bhs,bshd->bhd', w, Vh).reshape(B, D)
    return w, out


if __name__ == "__main__":
    # Small but tile-aligned shapes: B=16 with b_tile=8 exercises the batch grid axis,
    # D=128 keeps every block lane-aligned.
    B, S, D, H = 16, 8, 128, 4

    key = jax.random.PRNGKey(0)
    k_par, k_in = jax.random.split(key)
    kp = jax.random.split(k_par, 3)
    params = {
        "qoe": _init_attention_params(kp[0], D),
        "chonghe": _init_attention_params(kp[1], D),
        "fufei": _init_attention_params(kp[2], D),
    }

    ki = jax.random.split(k_in, 6)
    hist_qoe = jax.random.normal(ki[0], (B, S, D), jnp.float32)
    hist_ch = jax.random.normal(ki[1], (B, S, D), jnp.float32)
    hist_fu = jax.random.normal(ki[2], (B, S, D), jnp.float32)
    tgt_qoe = jax.random.normal(ki[3], (B, D), jnp.float32)
    tgt_ch = jax.random.normal(ki[4], (B, D), jnp.float32)
    tgt_fu = jax.random.normal(ki[5], (B, D), jnp.float32)

    vec, w_qoe, w_ch, w_fu = history_target_attention_layer(
        hist_qoe, hist_ch, hist_fu, tgt_qoe, tgt_ch, tgt_fu, params, H, b_tile=8)
    jax.block_until_ready((vec, w_qoe, w_ch, w_fu))

    assert vec.shape == (B, 3 * D)
    assert w_qoe.shape == (B, H, S) and w_ch.shape == (B, H, S) and w_fu.shape == (B, H, S)

    # Exact-divide softmax: weights must sum to 1 along the history axis.
    for w in (w_qoe, w_ch, w_fu):
        assert jnp.allclose(jnp.sum(w, axis=-1), 1.0, atol=1e-5)

    # Pure-JAX f32 reference check. Tolerances account for the kernel's bf16 MXU operands
    # (f32 accumulation) on the projection matmuls.
    rw_qoe, rv_qoe = _reference_tower(tgt_qoe, hist_qoe, params["qoe"], H)
    rw_ch, rv_ch = _reference_tower(tgt_ch, hist_ch, params["chonghe"], H)
    rw_fu, rv_fu = _reference_tower(tgt_fu, hist_fu, params["fufei"], H)
    ref_vec = jnp.concatenate([rv_qoe, rv_ch, rv_fu], axis=1)
    assert jnp.allclose(vec, ref_vec, rtol=5e-2, atol=2e-2)
    assert jnp.allclose(w_qoe, rw_qoe, rtol=5e-2, atol=2e-2)
    assert jnp.allclose(w_ch, rw_ch, rtol=5e-2, atol=2e-2)
    assert jnp.allclose(w_fu, rw_fu, rtol=5e-2, atol=2e-2)

    print("KERNEL_OK")
</pallas_src>

<mosaic_0001>
module attributes {stable_mosaic.version = 11 : i64} {
  func.func @_fused_history_target_attention_kernel(%arg0: i32, %arg1: i32, %arg2: memref<1x8x128xf32, #tpu.memory_space<vmem>>, %arg3: memref<1x64x128xf32, #tpu.memory_space<vmem>>, %arg4: memref<1x128x128xbf16, #tpu.memory_space<vmem>>, %arg5: memref<1x1x128xf32, #tpu.memory_space<vmem>>, %arg6: memref<1x128x128xbf16, #tpu.memory_space<vmem>>, %arg7: memref<1x1x128xf32, #tpu.memory_space<vmem>>, %arg8: memref<1x128x128xbf16, #tpu.memory_space<vmem>>, %arg9: memref<1x1x128xf32, #tpu.memory_space<vmem>>, %arg10: memref<128x4xf32, #tpu.memory_space<vmem>>, %arg11: memref<4x128xf32, #tpu.memory_space<vmem>>, %arg12: memref<1x8x8x4xf32, #tpu.memory_space<vmem>>, %arg13: memref<8x128xf32, #tpu.memory_space<vmem>>) attributes {dimension_semantics = [#tpu.dimension_semantics<arbitrary>, #tpu.dimension_semantics<parallel>], iteration_bounds = array<i64: 3, 2>, scalar_prefetch = 0 : i64, scratch_operands = 0 : i64, tpu.core_type = #tpu.core_type<tc>, window_params = [{transform_indices = @transform_0, window_bounds = array<i64: 1, 8, 128>}, {transform_indices = @transform_1, window_bounds = array<i64: 1, 64, 128>}, {transform_indices = @transform_2, window_bounds = array<i64: 1, 128, 128>}, {transform_indices = @transform_3, window_bounds = array<i64: 1, 1, 128>}, {transform_indices = @transform_4, window_bounds = array<i64: 1, 128, 128>}, {transform_indices = @transform_5, window_bounds = array<i64: 1, 1, 128>}, {transform_indices = @transform_6, window_bounds = array<i64: 1, 128, 128>}, {transform_indices = @transform_7, window_bounds = array<i64: 1, 1, 128>}, {pipeline_mode = #tpu.pipeline_mode<synchronous>, transform_indices = @transform_8, window_bounds = array<i64: 128, 4>}, {pipeline_mode = #tpu.pipeline_mode<synchronous>, transform_indices = @transform_9, window_bounds = array<i64: 4, 128>}, {transform_indices = @transform_10, window_bounds = array<i64: 1, 8, 8, 4>}, {transform_indices = @transform_11, window_bounds = array<i64: 8, 128>}]} {
    %c0 = arith.constant 0 : index
    %c0_0 = arith.constant 0 : index
    %c0_1 = arith.constant 0 : index
    %0 = vector.load %arg2[%c0, %c0_0, %c0_1] : memref<1x8x128xf32, #tpu.memory_space<vmem>>, vector<1x8x128xf32>
    %1 = vector.shape_cast %0 : vector<1x8x128xf32> to vector<8x128xf32>
    %2 = arith.truncf %1 : vector<8x128xf32> to vector<8x128xbf16>
    %c0_2 = arith.constant 0 : index
    %c0_3 = arith.constant 0 : index
    %c0_4 = arith.constant 0 : index
    %3 = vector.load %arg3[%c0_2, %c0_3, %c0_4] : memref<1x64x128xf32, #tpu.memory_space<vmem>>, vector<1x64x128xf32>
    %4 = vector.shape_cast %3 : vector<1x64x128xf32> to vector<64x128xf32>
    %5 = arith.truncf %4 : vector<64x128xf32> to vector<64x128xbf16>
    %c0_5 = arith.constant 0 : index
    %c0_6 = arith.constant 0 : index
    %c0_7 = arith.constant 0 : index
    %6 = vector.load %arg4[%c0_5, %c0_6, %c0_7] : memref<1x128x128xbf16, #tpu.memory_space<vmem>>, vector<1x128x128xbf16>
    %7 = vector.shape_cast %6 : vector<1x128x128xbf16> to vector<128x128xbf16>
    %cst = arith.constant dense<0.000000e+00> : vector<8x128xf32>
    %8 = tpu.matmul %2, %7, %cst {dimension_numbers = #tpu.dot_dimension_numbers<[1], [0], [0], [1], [0, 0, 1, 1], [], []>} : vector<8x128xbf16>, vector<128x128xbf16>, vector<8x128xf32> -> vector<8x128xf32>
    %c0_8 = arith.constant 0 : index
    %c0_9 = arith.constant 0 : index
    %c0_10 = arith.constant 0 : index
    %9 = vector.load %arg5[%c0_8, %c0_9, %c0_10] : memref<1x1x128xf32, #tpu.memory_space<vmem>>, vector<1x1x128xf32>
    %10 = vector.shape_cast %9 : vector<1x1x128xf32> to vector<1x128xf32>
    %11 = vector.broadcast %10 : vector<1x128xf32> to vector<8x128xf32>
    %12 = arith.addf %8, %11 : vector<8x128xf32>
    %c0_11 = arith.constant 0 : index
    %c0_12 = arith.constant 0 : index
    %c0_13 = arith.constant 0 : index
    %13 = vector.load %arg6[%c0_11, %c0_12, %c0_13] : memref<1x128x128xbf16, #tpu.memory_space<vmem>>, vector<1x128x128xbf16>
    %14 = vector.shape_cast %13 : vector<1x128x128xbf16> to vector<128x128xbf16>
    %cst_14 = arith.constant dense<0.000000e+00> : vector<64x128xf32>
    %15 = tpu.matmul %5, %14, %cst_14 {dimension_numbers = #tpu.dot_dimension_numbers<[1], [0], [0], [1], [0, 0, 1, 1], [], []>} : vector<64x128xbf16>, vector<128x128xbf16>, vector<64x128xf32> -> vector<64x128xf32>
    %c0_15 = arith.constant 0 : index
    %c0_16 = arith.constant 0 : index
    %c0_17 = arith.constant 0 : index
    %16 = vector.load %arg7[%c0_15, %c0_16, %c0_17] : memref<1x1x128xf32, #tpu.memory_space<vmem>>, vector<1x1x128xf32>
    %17 = vector.shape_cast %16 : vector<1x1x128xf32> to vector<1x128xf32>
    %18 = vector.broadcast %17 : vector<1x128xf32> to vector<64x128xf32>
    %19 = arith.addf %15, %18 : vector<64x128xf32>
    %c0_18 = arith.constant 0 : index
    %c0_19 = arith.constant 0 : index
    %c0_20 = arith.constant 0 : index
    %20 = vector.load %arg8[%c0_18, %c0_19, %c0_20] : memref<1x128x128xbf16, #tpu.memory_space<vmem>>, vector<1x128x128xbf16>
    %21 = vector.shape_cast %20 : vector<1x128x128xbf16> to vector<128x128xbf16>
    %cst_21 = arith.constant dense<0.000000e+00> : vector<64x128xf32>
    %22 = tpu.matmul %5, %21, %cst_21 {dimension_numbers = #tpu.dot_dimension_numbers<[1], [0], [0], [1], [0, 0, 1, 1], [], []>} : vector<64x128xbf16>, vector<128x128xbf16>, vector<64x128xf32> -> vector<64x128xf32>
    %c0_22 = arith.constant 0 : index
    %c0_23 = arith.constant 0 : index
    %c0_24 = arith.constant 0 : index
    %23 = vector.load %arg9[%c0_22, %c0_23, %c0_24] : memref<1x1x128xf32, #tpu.memory_space<vmem>>, vector<1x1x128xf32>
    %24 = vector.shape_cast %23 : vector<1x1x128xf32> to vector<1x128xf32>
    %25 = vector.broadcast %24 : vector<1x128xf32> to vector<64x128xf32>
    %26 = arith.addf %22, %25 : vector<64x128xf32>
    %27 = vector.shape_cast %12 : vector<8x128xf32> to vector<8x1x128xf32>
    %28 = vector.shape_cast %27 : vector<8x1x128xf32> to vector<8x1x128xf32>
    %29 = vector.broadcast %28 : vector<8x1x128xf32> to vector<8x8x128xf32>
    %30 = vector.shape_cast %29 : vector<8x8x128xf32> to vector<64x128xf32>
    %31 = arith.mulf %19, %30 : vector<64x128xf32>
    %c0_25 = arith.constant 0 : index
    %c0_26 = arith.constant 0 : index
    %32 = vector.load %arg10[%c0_25, %c0_26] : memref<128x4xf32, #tpu.memory_space<vmem>>, vector<128x4xf32>
    %cst_27 = arith.constant dense<0.000000e+00> : vector<64x4xf32>
    %33 = tpu.matmul %31, %32, %cst_27 {dimension_numbers = #tpu.dot_dimension_numbers<[1], [0], [0], [1], [0, 0, 1, 1], [], []>} : vector<64x128xf32>, vector<128x4xf32>, vector<64x4xf32> -> vector<64x4xf32>
    %34 = vector.shape_cast %33 : vector<64x4xf32> to vector<8x8x4xf32>
    %cst_28 = arith.constant dense<0xFF800000> : vector<8x4xf32>
    %35 = vector.multi_reduction <maximumf>, %34, %cst_28 [1] : vector<8x8x4xf32> to vector<8x4xf32>
    %36 = vector.shape_cast %35 : vector<8x4xf32> to vector<8x1x4xf32>
    %37 = vector.broadcast %36 : vector<8x1x4xf32> to vector<8x8x4xf32>
    %38 = arith.subf %34, %37 : vector<8x8x4xf32>
    %39 = math.exp %38 : vector<8x8x4xf32>
    %cst_29 = arith.constant dense<0.000000e+00> : vector<8x4xf32>
    %40 = vector.multi_reduction <add>, %39, %cst_29 [1] : vector<8x8x4xf32> to vector<8x4xf32>
    %41 = vector.shape_cast %40 : vector<8x4xf32> to vector<8x1x4xf32>
    %42 = vector.broadcast %41 : vector<8x1x4xf32> to vector<8x8x4xf32>
    %43 = arith.divf %39, %42 : vector<8x8x4xf32>
    %44 = vector.shape_cast %43 : vector<8x8x4xf32> to vector<64x4xf32>
    %c0_30 = arith.constant 0 : index
    %c0_31 = arith.constant 0 : index
    %45 = vector.load %arg11[%c0_30, %c0_31] : memref<4x128xf32, #tpu.memory_space<vmem>>, vector<4x128xf32>
    %cst_32 = arith.constant dense<0.000000e+00> : vector<64x128xf32>
    %46 = tpu.matmul %44, %45, %cst_32 {dimension_numbers = #tpu.dot_dimension_numbers<[1], [0], [0], [1], [0, 0, 1, 1], [], []>} : vector<64x4xf32>, vector<4x128xf32>, vector<64x128xf32> -> vector<64x128xf32>
    %47 = arith.mulf %46, %26 : vector<64x128xf32>
    %48 = vector.shape_cast %47 : vector<64x128xf32> to vector<8x8x128xf32>
    %cst_33 = arith.constant dense<0.000000e+00> : vector<8x128xf32>
    %49 = vector.multi_reduction <add>, %48, %cst_33 [1] : vector<8x8x128xf32> to vector<8x128xf32>
    %c0_34 = arith.constant 0 : index
    %c0_35 = arith.constant 0 : index
    %c0_36 = arith.constant 0 : index
    %c0_37 = arith.constant 0 : index
    %50 = vector.load %arg12[%c0_34, %c0_35, %c0_36, %c0_37] : memref<1x8x8x4xf32, #tpu.memory_space<vmem>>, vector<1x8x8x4xf32>
    %51 = vector.shape_cast %50 : vector<1x8x8x4xf32> to vector<8x8x4xf32>
    %52 = vector.shape_cast %43 : vector<8x8x4xf32> to vector<1x8x8x4xf32>
    tpu.vector_store %arg12[%c0_34, %c0_35, %c0_36, %c0_37], %52 {strides = array<i32>} : memref<1x8x8x4xf32, #tpu.memory_space<vmem>>, vector<1x8x8x4xf32>,
    %c0_38 = arith.constant 0 : index
    %c0_39 = arith.constant 0 : index
    %53 = vector.load %arg13[%c0_38, %c0_39] : memref<8x128xf32, #tpu.memory_space<vmem>>, vector<8x128xf32>
    tpu.vector_store %arg13[%c0_38, %c0_39], %49 {strides = array<i32>} : memref<8x128xf32, #tpu.memory_space<vmem>>, vector<8x128xf32>,
    return
  }
  func.func @transform_0(%arg0: i32, %arg1: i32) -> (i32, i32, i32) {
    %c0_i32 = arith.constant 0 : i32
    %c0_i32_0 = arith.constant 0 : i32
    return %arg0, %arg1, %c0_i32 : i32, i32, i32
  }
  func.func @transform_1(%arg0: i32, %arg1: i32) -> (i32, i32, i32) {
    %c0_i32 = arith.constant 0 : i32
    %c0_i32_0 = arith.constant 0 : i32
    return %arg0, %arg1, %c0_i32 : i32, i32, i32
  }
  func.func @transform_2(%arg0: i32, %arg1: i32) -> (i32, i32, i32) {
    %c0_i32 = arith.constant 0 : i32
    %c0_i32_0 = arith.constant 0 : i32
    %c0_i32_1 = arith.constant 0 : i32
    return %arg0, %c0_i32, %c0_i32_0 : i32, i32, i32
  }
  func.func @transform_3(%arg0: i32, %arg1: i32) -> (i32, i32, i32) {
    %c0_i32 = arith.constant 0 : i32
    %c0_i32_0 = arith.constant 0 : i32
    %c0_i32_1 = arith.constant 0 : i32
    return %arg0, %c0_i32, %c0_i32_0 : i32, i32, i32
  }
  func.func @transform_4(%arg0: i32, %arg1: i32) -> (i32, i32, i32) {
    %c0_i32 = arith.constant 0 : i32
    %c0_i32_0 = arith.constant 0 : i32
    %c0_i32_1 = arith.constant 0 : i32
    return %arg0, %c0_i32, %c0_i32_0 : i32, i32, i32
  }
  func.func @transform_5(%arg0: i32, %arg1: i32) -> (i32, i32, i32) {
    %c0_i32 = arith.constant 0 : i32
    %c0_i32_0 = arith.constant 0 : i32
    %c0_i32_1 = arith.constant 0 : i32
    return %arg0, %c0_i32, %c0_i32_0 : i32, i32, i32
  }
  func.func @transform_6(%arg0: i32, %arg1: i32) -> (i32, i32, i32) {
    %c0_i32 = arith.constant 0 : i32
    %c0_i32_0 = arith.constant 0 : i32
    %c0_i32_1 = arith.constant 0 : i32
    return %arg0, %c0_i32, %c0_i32_0 : i32, i32, i32
  }
  func.func @transform_7(%arg0: i32, %arg1: i32) -> (i32, i32, i32) {
    %c0_i32 = arith.constant 0 : i32
    %c0_i32_0 = arith.constant 0 : i32
    %c0_i32_1 = arith.constant 0 : i32
    return %arg0, %c0_i32, %c0_i32_0 : i32, i32, i32
  }
  func.func @transform_8(%arg0: i32, %arg1: i32) -> (i32, i32) {
    %c0_i32 = arith.constant 0 : i32
    %c0_i32_0 = arith.constant 0 : i32
    %c0_i32_1 = arith.constant 0 : i32
    return %c0_i32, %c0_i32_0 : i32, i32
  }
  func.func @transform_9(%arg0: i32, %arg1: i32) -> (i32, i32) {
    %c0_i32 = arith.constant 0 : i32
    %c0_i32_0 = arith.constant 0 : i32
    %c0_i32_1 = arith.constant 0 : i32
    return %c0_i32, %c0_i32_0 : i32, i32
  }
  func.func @transform_10(%arg0: i32, %arg1: i32) -> (i32, i32, i32, i32) {
    %c0_i32 = arith.constant 0 : i32
    %c0_i32_0 = arith.constant 0 : i32
    %c0_i32_1 = arith.constant 0 : i32
    return %arg0, %arg1, %c0_i32, %c0_i32_0 : i32, i32, i32, i32
  }
  func.func @transform_11(%arg0: i32, %arg1: i32) -> (i32, i32) {
    %c0_i32 = arith.constant 0 : i32
    return %arg1, %arg0 : i32, i32
  }
}

</mosaic_0001>

<bundles_post_ra>
// kernel: tpu_custom_call.1
= control target key start
LH: loop header
LB: loop body
LE: loop exit
PB: predicated region body
PF: predicated region fallthrough
CT: control target
= control target key end

     0   :  { %s3303_s0 = inlined_call_operand.vmem [shape: f32[3,16,128], index: 0, kind: input, shape index: {}]   ;;  %s3304_s1 = inlined_call_operand.hbm [shape: f32[3,128,128], index: 1, kind: input, shape index: {}]   ;;  %s3305_s2 = inlined_call_operand.hbm [shape: bf16[3,128,128], index: 2, kind: input, shape index: {}]   ;;  %s3306_s3 = inlined_call_operand.vmem [shape: f32[3,1,128], index: 3, kind: input, shape index: {}]   ;;  %s3307_s4 = inlined_call_operand.hbm [shape: bf16[3,128,128], index: 4, kind: input, shape index: {}]   ;;  %s3308_s5 = inlined_call_operand.vmem [shape: f32[3,1,128], index: 5, kind: input, shape index: {}]   ;;  %s3309_s6 = inlined_call_operand.hbm [shape: bf16[3,128,128], index: 6, kind: input, shape index: {}]   ;;  %s3310_s7 = inlined_call_operand.vmem [shape: f32[3,1,128], index: 7, kind: input, shape index: {}]   ;;  %s3311_s8 = inlined_call_operand.vmem [shape: f32[128,4], index: 8, kind: input, shape index: {}]   ;;  %s3312_s9 = inlined_call_operand.vmem [shape: f32[4,128], index: 9, kind: input, shape index: {}]   ;;  %s3313_s10 = inlined_call_operand.vmem [shape: f32[3,16,8,4], index: 10, kind: output, shape index: {0}]   ;;  %s3314_s11 = inlined_call_operand.hbm [shape: f32[16,384], index: 11, kind: output, shape index: {1}]  }
   0x1   :  { %3343 = sst [smem:[#allocation25_spill]] %s3303_s0 }
   0x2   :  { %3344 = sst [smem:[#allocation26_spill]] %s3305_s2 }
   0x3   :  { %3345 = sst [smem:[#allocation27_spill]] %s3306_s3 }
   0x4   :  { %3346 = sst [smem:[#allocation28_spill]] %s3308_s5 }
   0x5   :  { %3347 = sst [smem:[#allocation29_spill]] %s3310_s7 }
   0x6   :  { %3348 = sst [smem:[#allocation30_spill]] %s3311_s8 }
   0x7   :  { %3349 = sst [smem:[#allocation31_spill]] %s3312_s9 }
   0x8   :  { %3350 = sst [smem:[#allocation32_spill]] %s3313_s10 }
   0x9   :  { %3351 = sst [smem:[#allocation33_spill]] %s3314_s11 }
   0xa   :  { %17 = vsyncpa [#allocation3], 0 }
   0xb   :  { %19 = vsyncpa [#allocation3 + $0x1], 0 }
   0xc   :  { %20 = vsyncpa [#allocation6], 0 }
   0xd   :  { %22 = vsyncpa [#allocation6 + $0x1], 0 }
   0xe   :  { %23 = vsyncpa [#allocation9], 0 }
   0xf   :  { %25 = vsyncpa [#allocation9 + $0x1], 0 }
  0x10   :  { %26 = vsyncpa [#allocation4], 0 }
  0x11   :  { %28 = vsyncpa [#allocation4 + $0x1], 0  ;;  %s2695_s17 = smov 0   ;;  %s2697_s18 = smov 0  }
  0x12   :  { %s2699_s19 = smov 0   ;;  %s2701_s20 = smov 0  }
  0x13   :  { %s2703_s21 = smov 0   ;;  %s2705_s22 = smov 0  }
  0x14   :  { %s2707_s23 = smov 0   ;;  %s2709_s24 = smov 0  }
  0x15   :  { %s2711_s25 = smov 0   ;;  %s2713_s26 = smov 0  }
  0x16   :  { %s2715_s27 = smov 0  }
  0x17 LB: > { %3352 = sst [smem:[#allocation15_spill]] %s2585_s18  ;;  %p3318_p0 = scmp.eq.s32.totalorder %s2621_s27, 0  ;;  %s2621_s27 = sphi %s2715_s27, %s34_s27   ;;  %s2617_s26 = sphi %s2713_s26, %s3416_s26   ;;  %s2613_s25 = sphi %s2711_s25, %s3415_s25   ;;  %s2609_s24 = sphi %s2709_s24, %s3414_s24   ;;  %s2605_s23 = sphi %s2707_s23, %s3413_s23   ;;  %s2601_s22 = sphi %s2705_s22, %s3412_s22   ;;  %s2597_s21 = sphi %s2703_s21, %s3411_s21   ;;  %s2593_s20 = sphi %s2701_s20, %s3410_s20   ;;  %s2589_s19 = sphi %s2699_s19, %s3409_s19   ;;  %s2585_s18 = sphi %s2697_s18, %s3408_s18   ;;  %s2581_s17 = sphi %s2695_s17, %s3407_s17  }
  0x18   : > { %3353 = sst [smem:[#allocation16_spill]] %s2605_s23  ;;  %p116_p1 = scmp.ne.s32.totalorder %s2589_s19, %s2585_s18 }
  0x19   : > { %3354 = sst [smem:[#allocation17_spill]] %s2609_s24  ;;  %p3317_p3 = scmp.lt.s32.totalorder %s2621_s27, 6 }
  0x1a   : > { %p118_p4 = por %p116_p1, %p3318_p0  ;;  %s414_s29 = sand.u32 1, %s2621_s27  }
  0x1b   : > { %s3316_s30 = sand.u32 1, %s2589_s19   ;;  %s2766_s13 = sshll.u32 %s2617_s26, 10 }
  0x1c   : > { %s2763_s12 = sshll.u32 %s3316_s30, 6  ;;  %s3355_s2 = sld [smem:[#allocation26_spill]] }
  0x1d   : > { %s418_s28 = scalar_lea.vmem [#allocation5], %s2763_s12  ;;  %p2777_p5 = pnand %p3317_p3, %p118_p4 }
  0x1e   : > { %s425_s11 = sshll.u32 %s418_s28, 4  ;;  %s2783_s30 = scalar_lea.sflag [#allocation6], %s414_s29  ;;  %s2781_s11 = int_to_ptr.vmem [resolvable:$true] %s425_s11 }
  0x1f   : > { %s3356_s7 = scalar_select %p2777_p5, 1, 0 }
  0x20   : > { %p2789_p7 = pneg %p2777_p5 }
  0x22   : > { %s2772_s16 = scalar_lea.hbm %s3355_s2, %s2766_s13  ;;  %s2376_s9 = scalar_lea.hbm %s3355_s2, 3072 }
  0x23   : > { %s2371_s10 = scalar_lea.hbm %s2772_s16, 1024  ;;  %p2377_p10 = scmp.lt.u32.totalorder %s2772_s16, %s3355_s2 }
  0x24   : > { %p2372_p6 = scmp.ne.s32.totalorder %s2772_s16, %s2371_s10  ;;  %p2378_p11 = scmp.lt.u32.totalorder %s2376_s9, %s2371_s10 }
  0x25   : > { %p2380_p13 = scmp.lt.u32.totalorder %s2371_s10, %s2772_s16 }
  0x26   : > { %p2374_p8 = pnand %p2789_p7, %p2372_p6  ;;  %p2379_p12 = por %p2378_p11, %p2377_p10 }
  0x28   : > { %p2375_p9 = pneg %p2374_p8  ;;  %p2381_p1 = por %p2380_p13, %p2379_p12 }
  0x2a   : > { %p2382_p4 = pnand %p2381_p1, %p2375_p9 }
  0x2c   : > { %2385 = shalt.err (!%p2382_p4)
}
  0x2d   : > { %s2386_s29 = scalar_lea.vmem %s2781_s11, 1024  ;;  %s2623_s28 = smov [#allocation5]  }
  0x2e   : > { %p2387_p6 = scmp.ne.s32.totalorder %s2781_s11, %s2386_s29  ;;  %s2391_s15 = sshll.u32 %s2623_s28, 4  ;;  %s2392_s15 = int_to_ptr.vmem [resolvable:$false] %s2391_s15 }
  0x2f   : > { %s2393_s3 = scalar_lea.vmem %s2392_s15, 2048  ;;  %p2394_p2 = scmp.lt.s32.totalorder %s2781_s11, %s2392_s15 }
  0x30   : > { %p2389_p8 = pnand %p2387_p6, %p2789_p7  ;;  %p2395_p0 = scmp.lt.s32.totalorder %s2393_s3, %s2386_s29 }
  0x32   : > { %p2390_p3 = pneg %p2389_p8  ;;  %p2396_p10 = por %p2395_p0, %p2394_p2 }
  0x34   : > { %p2397_p11 = pnand %p2396_p10, %p2390_p3 }
  0x36   : > { %2400 = shalt.err (!%p2397_p11)
}
  0x37   : > { %s3319_s5 = smov 64   ;;  %s3321_s9 = smov 4  }
  0x38   : > { %2207 = dma.hbm_to_vmem [thread:$0]  (!%p2777_p5), %s2772_s16, 1024, %s2781_s11, %s2783_s30, %s3319_s5, %s3319_s5, %s3321_s9  }
  0x39   : > { %p1910_p0 = scmp.ge.s32.totalorder %s2621_s27, 1  ;;  %p493_p2 = scmp.lt.s32.totalorder %s2621_s27, 7 }
  0x3a   : > { %s2823_s29 = sadd.s32 4294967295, %s2621_s27   ;;  %s1894_s28 = sadd.s32 4294967294, %s2621_s27  }
  0x3b   : > { %p2818_p3 = pnand %p1910_p0, %p493_p2  ;;  %3360 = sst [smem:[#allocation19_spill]] %s2823_s29 }
  0x3c   : > { %s43_s15 = sadd.s32 1, %s2613_s25  ;;  %s46_s11 = sadd.s32 1, %s2617_s26 }
  0x3d   : > { %s3358_s10 = scalar_select %p2818_p3, 1, 0 }
  0x3e   : > { %p44_p9 = scmp.ge.s32.totalorder %s43_s15, 2  ;;  %s83_s16 = sadd.s32 1, %s2601_s22 }
  0x3f   : > { %3359 = sst [smem:[#allocation18_spill]] %s3358_s10  ;;  %p90_p12 = scmp.ne.s32.totalorder %s2601_s22, %s2597_s21 }
  0x40   : > { %s3418_s15 = smov (%p44_p9, %s43_s15), 0  ;;  %s3420_s11 = smov (!%p44_p9, %s46_s11), %s2617_s26 }
  0x41   : > { %3361 = sst [smem:[#allocation20_spill]] %s3418_s15  ;;  %s79_s3 = ssub.s32 %s2613_s25, %s3418_s15 }
  0x42   : > { %p3362_p13 = scmp.eq.s32.totalorder %s2621_s27, 0  ;;  %p48_p4 = scmp.ge.s32.totalorder %s3420_s11, 3 }
  0x43   : > { %p3325_p6 = scmp.ne.s32.totalorder %s2597_s21, %s2593_s20  ;;  %p97_p8 = scmp.eq.s32.totalorder %s2823_s29, 0 }
  0x44   : > { %p2841_p1 = por %p3362_p13, %p90_p12  ;;  %p348_p10 = scmp.eq.s32.totalorder %s2823_s29, 5 }
  0x45   : > { %s3422_s11 = smov (%p48_p4, %s3420_s11), 0  ;;  %p2854_p11 = por %p97_p8, %p3325_p6 }
  0x46   : > { %3364 = sst [smem:[#allocation21_spill]] %s3422_s11  ;;  %p3367_p0 = scmp.ne.s32.totalorder %s2585_s18, %s2581_s17 }
  0x47   : > { %s3365_s9 = scalar_select %p2854_p11, 1, 0 }
  0x48   : > { %p2861_p2 = por %p3367_p0, %p97_p8  ;;  %s78_s15 = ssub.s32 %s2617_s26, %s3422_s11 }
  0x49   : > { %3366 = sst [smem:[#allocation22_spill]] %s3365_s9  ;;  %p2870_p9 = por %p348_p10, %p90_p12 }
  0x4a   : > { %s3368_s2 = scalar_select %p2861_p2, 1, 0 }
  0x4b   : > { %s3370_s8 = scalar_select %p2870_p9, 1, 0 }
  0x4c   : > { %3369 = sst [smem:[#allocation23_spill]] %s3368_s2  ;;  %s80_s0 = sor.u32 %s79_s3, %s78_s15 }
  0x4d   : > { %3371 = sst [smem:[#allocation24_spill]] %s3370_s8  ;;  %p107_p13 = scmp.eq.s32.totalorder %s78_s15, 0 }
  0x4e   : > { %p81_p4 = scmp.eq.s32.totalorder %s80_s0, 0  ;;  %p354_p6 = scmp.eq.s32.totalorder %s1894_s28, 5 }
  0x4f   : > { %s3372_s23 = sadd.s32 1, %s2589_s19  ;;  %p3373_p8 = scmp.ne.s32.totalorder %s2597_s21, %s2593_s20 }
  0x50   : > { %s2877_s24 = scalar_select %p107_p13, %s2589_s19, %s3372_s23  }
  0x51   : > { %s2880_s17 = scalar_select %p81_p4, %s2601_s22, %s83_s16  }
  0x52   : > { %p2885_p0 = por %p354_p6, %p3373_p8  ;;  %s391_s11 = sand.u32 1, %s2601_s22  }
  0x53   : > { %s1897_s18 = sshll.u32 %s391_s11, 6  ;;  %s1898_s29 = sshll.u32 %s2613_s25, 3 }
  0x54   : > { %s3374_s2 = scalar_select %p2885_p0, 1, 0 }
  0x55   : > { %s1899_s8 = sshll.u32 %s2617_s26, 4  ;;  %s395_s3 = scalar_lea.vmem [#allocation2], %s1897_s18 }
  0x56   : > { %s404_s9 = sshll.u32 %s395_s3, 4  ;;  %s401_s10 = sadd.s32 %s1899_s8, %s1898_s29  ;;  %s2892_s9 = int_to_ptr.vmem [resolvable:$true] %s404_s9 }
  0x57   : > { %s1900_s0 = sshll.u32 %s401_s10, 7  ;;  %p3375_p12 = scmp.lt.s32.totalorder %s2621_s27, 6 }
  0x58   : > { %s2905_s16 = scalar_lea.hbm %s3304_s1, %s1900_s0  ;;  %s2907_s8 = scalar_lea.sflag [#allocation3], %s391_s11 }
  0x59   : > { %p2898_p10 = pnand %p3375_p12, %p2841_p1  ;;  %s2401_s18 = scalar_lea.hbm %s2905_s16, 1024 }
  0x5a   : > { %p2402_p6 = scmp.ne.s32.totalorder %s2905_s16, %s2401_s18  ;;  %s2406_s29 = scalar_lea.hbm %s3304_s1, 6144 }
  0x5b   : > { %p2403_p1 = pneg %p2898_p10  ;;  %p2407_p8 = scmp.lt.u32.totalorder %s2905_s16, %s3304_s1 }
  0x5c   : > { %p2408_p12 = scmp.lt.u32.totalorder %s2406_s29, %s2401_s18  ;;  %p2410_p9 = scmp.lt.u32.totalorder %s2401_s18, %s2905_s16 }
  0x5d   : > { %p2404_p13 = pnand %p2403_p1, %p2402_p6 }
  0x5e   : > { %p2409_p0 = por %p2408_p12, %p2407_p8 }
  0x5f   : > { %p2405_p4 = pneg %p2404_p13 }
  0x60   : > { %p2411_p2 = por %p2410_p9, %p2409_p0 }
  0x62   : > { %p2412_p11 = pnand %p2411_p2, %p2405_p4 }
  0x64   : > { %2415 = shalt.err (!%p2412_p11)
}
  0x65   : > { %s2416_s11 = scalar_lea.vmem %s2892_s9, 1024  ;;  %s2626_s28 = smov [#allocation2]  }
  0x66   : > { %p2417_p6 = scmp.ne.s32.totalorder %s2892_s9, %s2416_s11  ;;  %s2421_s15 = sshll.u32 %s2626_s28, 4  ;;  %s2422_s15 = int_to_ptr.vmem [resolvable:$false] %s2421_s15 }
  0x67   : > { %s2423_s5 = scalar_lea.vmem %s2422_s15, 2048  ;;  %p2424_p5 = scmp.lt.s32.totalorder %s2892_s9, %s2422_s15 }
  0x68   : > { %p2419_p13 = pnand %p2417_p6, %p2403_p1  ;;  %p2425_p8 = scmp.lt.s32.totalorder %s2423_s5, %s2416_s11 }
  0x6a   : > { %p2420_p3 = pneg %p2419_p13  ;;  %p2426_p12 = por %p2425_p8, %p2424_p5 }
  0x6c   : > { %p2427_p9 = pnand %p2426_p12, %p2420_p3 }
  0x6e   : > { %2430 = shalt.err (!%p2427_p9)
}
  0x6f   : > { %s2627_s18 = smov 128   ;;  %s2628_s10 = smov 8  }
  0x70   : > { %2204 = dma.hbm_to_vmem [thread:$0]  (!%p2898_p10), %s2905_s16, 1024, %s2892_s9, %s2907_s8, %s2627_s18, %s2627_s18, %s2628_s10  }
  0x71   : > { %s2939_s0 = scalar_lea.hbm %s3307_s4, %s2766_s13  ;;  %s445_s11 = scalar_lea.vmem [#allocation7], %s2763_s12 }
  0x72   : > { %s452_s28 = sshll.u32 %s445_s11, 4  ;;  %s2431_s15 = scalar_lea.hbm %s2939_s0, 1024  ;;  %s2942_s28 = int_to_ptr.vmem [resolvable:$true] %s452_s28 }
  0x73   : > { %p2432_p5 = scmp.ne.s32.totalorder %s2939_s0, %s2431_s15  ;;  %s2436_s16 = scalar_lea.hbm %s3307_s4, 3072 }
  0x74   : > { %p2437_p2 = scmp.lt.u32.totalorder %s2939_s0, %s3307_s4  ;;  %p2438_p0 = scmp.lt.u32.totalorder %s2436_s16, %s2431_s15 }
  0x75   : > { %p2434_p3 = pnand %p2432_p5, %p2789_p7  ;;  %p2440_p1 = scmp.lt.u32.totalorder %s2431_s15, %s2939_s0 }
  0x76   : > { %p2439_p10 = por %p2438_p0, %p2437_p2 }
  0x77   : > { %p2435_p11 = pneg %p2434_p3 }
  0x78   : > { %p2441_p4 = por %p2440_p1, %p2439_p10 }
  0x7a   : > { %p2442_p6 = pnand %p2441_p4, %p2435_p11 }
  0x7c   : > { %2445 = shalt.err (!%p2442_p6)
}
  0x7d   : > { %s2446_s18 = scalar_lea.vmem %s2942_s28, 1024  ;;  %s2629_s10 = smov [#allocation7]  }
  0x7e   : > { %p2447_p13 = scmp.ne.s32.totalorder %s2942_s28, %s2446_s18  ;;  %s2451_s29 = sshll.u32 %s2629_s10, 4  ;;  %s2452_s29 = int_to_ptr.vmem [resolvable:$false] %s2451_s29 }
  0x7f   : > { %s2453_s3 = scalar_lea.vmem %s2452_s29, 2048  ;;  %p2454_p9 = scmp.lt.s32.totalorder %s2942_s28, %s2452_s29 }
  0x80   : > { %p2449_p8 = pnand %p2447_p13, %p2789_p7  ;;  %p2455_p5 = scmp.lt.s32.totalorder %s2453_s3, %s2446_s18 }
  0x82   : > { %p2450_p12 = pneg %p2449_p8  ;;  %p2456_p3 = por %p2455_p5, %p2454_p9 }
  0x84   : > { %p2457_p2 = pnand %p2456_p3, %p2450_p12 }
  0x86   : > { %2460 = shalt.err (!%p2457_p2)
}
  0x87   : > { %p3377_p11 = scmp.ne.s32.totalorder %s3356_s7, 0  ;;  %s3378_s11 = smov 4  }
  0x88   : > { %s3379_s15 = smov 64   ;;  %s2973_s16 = scalar_lea.hbm %s3309_s6, %s2766_s13 }
  0x89   : > { %2210 = dma.hbm_to_vmem [thread:$0]  (!%p3377_p11), %s2939_s0, 1024, %s2942_s28, %s2783_s30, %s3379_s15, %s3379_s15, %s3378_s11  }
  0x8a   : > { %s472_s8 = scalar_lea.vmem [#allocation8], %s2763_s12  ;;  %s3380_s18 = sand.u32 1, %s2589_s19  }
  0x8b   : > { %s479_s5 = sshll.u32 %s472_s8, 4  ;;  %s2980_s10 = scalar_lea.sflag [#allocation9], %s3380_s18  ;;  %s2976_s5 = int_to_ptr.vmem [resolvable:$true] %s479_s5 }
  0x8c   : > { %s2461_s29 = scalar_lea.hbm %s2973_s16, 1024  ;;  %s2466_s13 = scalar_lea.hbm %s3309_s6, 3072 }
  0x8d   : > { %p2462_p0 = scmp.ne.s32.totalorder %s2973_s16, %s2461_s29  ;;  %p2467_p4 = scmp.lt.u32.totalorder %s2973_s16, %s3309_s6 }
  0x8e   : > { %p2468_p6 = scmp.lt.u32.totalorder %s2466_s13, %s2461_s29  ;;  %p2470_p8 = scmp.lt.u32.totalorder %s2461_s29, %s2973_s16 }
  0x8f   : > { %p2464_p10 = pnand %p2462_p0, %p2789_p7 }
  0x90   : > { %p2469_p13 = por %p2468_p6, %p2467_p4 }
  0x91   : > { %p2465_p1 = pneg %p2464_p10 }
  0x92   : > { %p2471_p12 = por %p2470_p8, %p2469_p13 }
  0x94   : > { %p2472_p9 = pnand %p2471_p12, %p2465_p1 }
  0x96   : > { %2475 = shalt.err (!%p2472_p9)
}
  0x97   : > { %s2476_s12 = scalar_lea.vmem %s2976_s5, 1024  ;;  %s2630_s23 = smov [#allocation8]  }
  0x98   : > { %p2477_p5 = scmp.ne.s32.totalorder %s2976_s5, %s2476_s12  ;;  %s2481_s9 = sshll.u32 %s2630_s23, 4  ;;  %s2482_s9 = int_to_ptr.vmem [resolvable:$false] %s2481_s9 }
  0x99   : > { %s2483_s8 = scalar_lea.vmem %s2482_s9, 2048  ;;  %p2484_p0 = scmp.lt.s32.totalorder %s2976_s5, %s2482_s9 }
  0x9a   : > { %p2479_p3 = pnand %p2477_p5, %p2789_p7  ;;  %p2485_p10 = scmp.lt.s32.totalorder %s2483_s8, %s2476_s12 }
  0x9c   : > { %p2480_p2 = pneg %p2479_p3  ;;  %p2486_p4 = por %p2485_p10, %p2484_p0 }
  0x9e   : > { %p2487_p6 = pnand %p2486_p4, %p2480_p2 }
  0xa0   : > { %2490 = shalt.err (!%p2487_p6)
}
  0xa1   : > { %2213 = dma.hbm_to_vmem [thread:$0]  (!%p3377_p11), %s2973_s16, 1024, %s2976_s5, %s2980_s10, %s3379_s15, %s3379_s15, %s3378_s11  }
  0xa2   : > { %s3381_s14 = sld [smem:[#allocation18_spill]] }
  0xa8   : > { %p3382_p7 = scmp.ne.s32.totalorder %s3381_s14, 0 }
  0xa9   : > { %s3383_s18 = sld [smem:[#allocation22_spill]] (!%p3382_p7)  ;;  %s3010_s29 = sand.u32 (!%p3382_p7), 1, %s2597_s21  }
  0xaa   : > { %497 = sbr.rel (%p3382_p7) target bundleno = 974 (0x3ce), region = 60  ;;  %s1911_s30 = sshll.u32 (!%p3382_p7), %s3010_s29, 6 }
  0xab   : > { %s500_s0 = scalar_lea.sflag (!%p3382_p7), [#allocation3], %s3010_s29  ;;  %s3014_s13 = scalar_lea.vmem (!%p3382_p7), [#allocation2], %s1911_s30 }
  0xaf   : > { %p3384_p1 = scmp.ne.s32.totalorder (!%p3382_p7), %s3383_s18, 0 }
  0xb1   : > { %2564 = dma.done.wait (%p3384_p1), %s500_s0, 1024  }
  0xb2   : > { %2566 = vsyncadd (%p3384_p1), %s500_s0, 4294966272  ;;  %s3385_s7 = sld [smem:[#allocation19_spill]]  ;;  %s3386_s11 = sld [smem:[#allocation15_spill]] }
  0xb3   : > { %s3387_s15 = sld [smem:[#allocation23_spill]] }
  0xb8   : > { %s508_s16 = sand.u32 1, %s3385_s7   ;;  %s510_s5 = sand.u32 1, %s3386_s11  }
  0xb9   : > { %s1912_s10 = sshll.u32 %s510_s5, 6  ;;  %s509_s28 = scalar_lea.sflag [#allocation6], %s508_s16 }
  0xba   : > { %s3022_s3 = scalar_lea.vmem [#allocation5], %s1912_s10  ;;  %p3388_p11 = scmp.ne.s32.totalorder %s3387_s15, 0 }
  0xbc   : > { %2568 = dma.done.wait (%p3388_p11), %s509_s28, 2048  }
  0xbd   : > { %2570 = vsyncadd (%p3388_p11), %s509_s28, 4294965248  ;;  %s3028_s12 = scalar_lea.vmem [#allocation7], %s1912_s10  ;;  %s527_s23 = scalar_lea.sflag [#allocation9], %s510_s5 }
  0xbe   : > { %s3030_s9 = scalar_lea.vmem [#allocation8], %s1912_s10 }
  0xbf   : > { %2572 = dma.done.wait (%p3388_p11), %s527_s23, 1024  }
  0xc0   : > { %2574 = vsyncadd (%p3388_p11), %s527_s23, 4294966272  ;;  %s3389_s8 = sld [smem:[#allocation17_spill]]  ;;  %v2631_v0 = vmov 0.0   ;;  %vm2632_vm0 = vmmov 0   ;;  %s3390_s14 = sld [smem:[#allocation16_spill]]  ;;  %v2315_v1 = vld [vmem:[%s3022_s3] sm:$0xff]   ;;  %v1041_v57 = vlaneseq }
  0xc1   : > { %2030 = vmatprep.subr.bf16.mxu0 %v2631_v0  ;;  %2046 = vmatprep.mubr.msk.bf16.mxu0 %vm2632_vm0, %v2631_v0  ;;  %v2316_v2 = vld [vmem:[%s3028_s12] sm:$0xff]   ;;  %v2317_v3 = vld [vmem:[%s3022_s3 + $0x8] sm:$0xff]   ;;  %v2320_v5 = vld [vmem:[%s3028_s12 + $0x10] sm:$0xff]   ;;  %s3391_s5 = sld [smem:[#allocation25_spill]]  ;;  %v2633_v55 = vmov 1966171168  }
  0xc2   : > { %2031 = vmatpush3.bf16.msra.mxu0 %v2315_v1  ;;  %2050 = vmatprep.subr.bf16.mxu1 %v2316_v2  ;;  %v2318_v4 = vld [vmem:[%s3028_s12 + $0x8] sm:$0xff]   ;;  %v2319_v6 = vld [vmem:[%s3022_s3 + $0x10] sm:$0xff]   ;;  %v2322_v7 = vld [vmem:[%s3028_s12 + $0x18] sm:$0xff]   ;;  %v1039_v56 = vunpack.c.l.s4 %v2633_v55  ;;  %v1042_v59 = vshrl.u32 %v1041_v57, 7  ;;  %vm1433_vm1 = vcmask 1043456   ;;  %vm1255_vm2 = vcmask 31744  }
  0xc3   : > { %2032 = vmatprep.subr.bf16.mxu0 %v2631_v0  ;;  %2051 = vmatpush3.bf16.msra.mxu1 %v2316_v2  ;;  %v2321_v8 = vld [vmem:[%s3022_s3 + $0x18] sm:$0xff]   ;;  %v2324_v9 = vld [vmem:[%s3028_s12 + $0x20] sm:$0xff]   ;;  %v642_v12 = vld [vmem:[%s3014_s13 + $0x8] sm:$0xff]  ;;  %vm1614_vm3 = vcmask 1041409   ;;  %vm1616_vm4 = vcmask 1042434   ;;  %vm1618_vm5 = vcmask 1043459  }
  0xc4   : > { %2052 = vmatprep.subr.bf16.mxu1 %v2318_v4  ;;  %v2323_v10 = vld [vmem:[%s3022_s3 + $0x20] sm:$0xff]   ;;  %v2326_v13 = vld [vmem:[%s3028_s12 + $0x28] sm:$0xff]   ;;  %v2328_v16 = vld [vmem:[%s3028_s12 + $0x30] sm:$0xff]   ;;  %v1040_v58 = vunpack.c.0.s8 %v1039_v56  ;;  %vm1620_vm6 = vcmask 1044484   ;;  %vm1622_vm7 = vcmask 1045509   ;;  %vm1624_vm8 = vcmask 1046534  }
  0xc5   : > { %v641_v11 = vld [vmem:[%s3014_s13] sm:$0xff]  ;;  %v2325_v15 = vld [vmem:[%s3022_s3 + $0x28] sm:$0xff]   ;;  %v2327_v17 = vld [vmem:[%s3022_s3 + $0x30] sm:$0xff]   ;;  %vm1626_vm9 = vcmask 1047559  }
  0xc6   : > { %p610_p13 = scmp.lt.s32.totalorder %s3389_s8, 2  ;;  %2033 = vmatpush3.bf16.msra.mxu0 %v2317_v3  ;;  %p612_p8 = scmp.lt.s32.totalorder %s3390_s14, 1  ;;  %v649_v14 = vpack.c.bf16 %v642_v12, %v641_v11  ;;  %v2330_v18 = vld [vmem:[%s3028_s12 + $0x38] sm:$0xff]   ;;  %v643_v23 = vld [vmem:[%s3014_s13 + $0x10] sm:$0xff]  ;;  %v645_v26 = vld [vmem:[%s3014_s13 + $0x20] sm:$0xff]  ;;  %v1043_v61 = vsub.s32 %v1040_v58, %v1042_v59 }
  0xc7   : > { %2034 = vmatprep.subr.bf16.mxu0 %v2631_v0  ;;  %2053 = vmatpush3.bf16.msra.mxu1 %v2318_v4  ;;  %v2329_v19 = vld [vmem:[%s3022_s3 + $0x38] sm:$0xff]   ;;  %v646_v27 = vld [vmem:[%s3014_s13 + $0x28] sm:$0xff]  ;;  %v647_v36 = vld [vmem:[%s3014_s13 + $0x30] sm:$0xff]  ;;  %s2634_s12 = smov [#allocation10]  }
  0xc8   : > { %s3045_s18 = scalar_select %p610_p13, %s3389_s8, 2  ;;  %2054 = vmatprep.subr.bf16.mxu1 %v2320_v5  ;;  %2066 = vmatprep.mubr.bf16.mxu1 %v649_v14  ;;  %v644_v24 = vld [vmem:[%s3014_s13 + $0x18] sm:$0xff]  ;;  %v3082_v32 = vpack.c.bf16 %v646_v27, %v645_v26  ;;  %v2333_v55 = vld [vmem:[%s3030_s9 + $0x10] sm:$0xff]   ;;  %v2335_v57 = vld [vmem:[%s3030_s9 + $0x20] sm:$0xff]  }
  0xc9   : > { %s613_s30 = scalar_select %p612_p8, %s3390_s14, 1  ;;  %v3080_v31 = vpack.c.bf16 %v644_v24, %v643_v23  ;;  %v648_v37 = vld [vmem:[%s3014_s13 + $0x38] sm:$0xff]  ;;  %v2336_v58 = vld [vmem:[%s3030_s9 + $0x28] sm:$0xff]  }
  0xca   : > { %2035 = vmatpush3.bf16.msra.mxu0 %v2319_v6  ;;  %s1916_s0 = sshll.u32 %s3045_s18, 1  ;;  %v3100_v41 = vpack.c.bf16 %v648_v37, %v647_v36  ;;  %v2334_v56 = vld [vmem:[%s3030_s9 + $0x18] sm:$0xff]   ;;  %s3395_s13 = sld [smem:[#allocation31_spill]] }
  0xcb   : > { %2036 = vmatprep.subr.bf16.mxu0 %v2631_v0  ;;  %2055 = vmatpush3.bf16.msra.mxu1 %v2320_v5  ;;  %s615_s7 = sadd.s32 %s1916_s0, %s613_s30  ;;  %s3392_s30 = sld [smem:[#allocation30_spill]] }
  0xcc   : > { %2056 = vmatprep.subr.bf16.mxu1 %v2322_v7  ;;  %s1917_s11 = sshll.u32 %s615_s7, 3  ;;  %s3394_s7 = sld [smem:[#allocation28_spill]] }
  0xcd   : > { %s617_s10 = scalar_lea.vmem %s3391_s5, %s1917_s11  ;;  %s1919_s16 = sshll.u32 %s3045_s18, 4 }
  0xce   : > { %2037 = vmatpush3.bf16.msra.mxu0 %v2321_v8  ;;  %v639_v20 = vld [vmem:[%s617_s10] sm:$0xff]  ;;  %s3393_s10 = sld [smem:[#allocation27_spill]]  ;;  %v1088_v8 = vsub.s32 0, %v1042_v59  ;;  %v2337_v59 = vld [vmem:[%s3030_s9 + $0x30] sm:$0xff]   ;;  %s3397_s0 = sld [smem:[#allocation32_spill]] }
  0xcf   : > { %2038 = vmatprep.subr.bf16.mxu0 %v2631_v0  ;;  %2057 = vmatpush3.bf16.msra.mxu1 %v2322_v7  ;;  %v640_v25 = vpack.c.bf16 %v639_v20, %v639_v20  ;;  %s3398_s11 = sld [smem:[#allocation29_spill]] }
  0xd0   : > { %2058 = vmatprep.subr.bf16.mxu1 %v2324_v9 }
  0xd1   : > { %v1134_v21 = vld [vmem:[%s3392_s30] sm:$0xff]  ;;  %v1135_v22 = vld [vmem:[%s3392_s30 + $0x8] sm:$0xff]  ;;  %v1136_v29 = vld [vmem:[%s3392_s30 + $0x10] sm:$0xff] }
  0xd2   : > { %2039 = vmatpush3.bf16.msra.mxu0 %v2323_v10  ;;  %v2156_v28 = vpack.c.bf16 %v1135_v22, %v1134_v21  ;;  %v1137_v30 = vld [vmem:[%s3392_s30 + $0x18] sm:$0xff]  ;;  %v1138_v34 = vld [vmem:[%s3392_s30 + $0x20] sm:$0xff]  ;;  %v1139_v35 = vld [vmem:[%s3392_s30 + $0x28] sm:$0xff]  ;;  %s624_s3 = scalar_lea.vmem %s3394_s7, %s3045_s18 }
  0xd3   : > { %2040 = vmatprep.subr.bf16.mxu0 %v2631_v0  ;;  %2059 = vmatpush3.bf16.msra.mxu1 %v2324_v9  ;;  %v2160_v33 = vpack.c.bf16 %v1137_v30, %v1136_v29  ;;  %v2164_v38 = vpack.c.bf16 %v1139_v35, %v1138_v34  ;;  %v1140_v39 = vld [vmem:[%s3392_s30 + $0x30] sm:$0xff]  ;;  %v1141_v40 = vld [vmem:[%s3392_s30 + $0x38] sm:$0xff]  ;;  %v1142_v43 = vld [vmem:[%s3392_s30 + $0x40] sm:$0xff] }
  0xd4   : > { %2060 = vmatprep.subr.bf16.mxu1 %v2326_v13  ;;  %v2168_v42 = vpack.c.bf16 %v1141_v40, %v1140_v39  ;;  %v1143_v44 = vld [vmem:[%s3392_s30 + $0x48] sm:$0xff]  ;;  %v1144_v46 = vld [vmem:[%s3392_s30 + $0x50] sm:$0xff]  ;;  %v1145_v47 = vld [vmem:[%s3392_s30 + $0x58] sm:$0xff]  ;;  %s621_s28 = scalar_lea.vmem %s3393_s10, %s3045_s18 }
  0xd5   : > { %v2172_v45 = vpack.c.bf16 %v1143_v44, %v1142_v43  ;;  %v2176_v48 = vpack.c.bf16 %v1145_v47, %v1144_v46  ;;  %v1146_v49 = vld [vmem:[%s3392_s30 + $0x60] sm:$0xff]  ;;  %v1147_v50 = vld [vmem:[%s3392_s30 + $0x68] sm:$0xff]  ;;  %v1148_v52 = vld [vmem:[%s3392_s30 + $0x70] sm:$0xff] }
  0xd6   : > { %2041 = vmatpush3.bf16.msra.mxu0 %v2325_v15  ;;  %v2180_v51 = vpack.c.bf16 %v1147_v50, %v1146_v49  ;;  %v1149_v53 = vld [vmem:[%s3392_s30 + $0x78] sm:$0xff]  ;;  %v1921_v60 = vld [vmem:[%s621_s28] ss:$0 sm:$0xff] }
  0xd7   : > { %2042 = vmatprep.subr.bf16.mxu0 %v2631_v0  ;;  %2061 = vmatpush3.bf16.msra.mxu1 %v2326_v13  ;;  %v2184_v54 = vpack.c.bf16 %v1149_v53, %v1148_v52  ;;  %v1930_v5 = vld [vmem:[%s624_s3] ss:$0 sm:$0xff] }
  0xd8   : > { %2062 = vmatprep.subr.bf16.mxu1 %v2328_v16  ;;  %v2331_v53 = vld [vmem:[%s3030_s9] sm:$0xff]  }
  0xda   : > { %2043 = vmatpush3.bf16.msra.mxu0 %v2327_v17 }
  0xdb   : > { %2044 = vmatprep.subr.bf16.mxu0 %v2631_v0  ;;  %2063 = vmatpush3.bf16.msra.mxu1 %v2328_v16 }
  0xdc   : > { %2064 = vmatprep.subr.bf16.mxu1 %v2330_v18 }
  0xde   : > { %2045 = vmatpush3.bf16.msra.mxu0 %v2329_v19 }
  0xdf   : > { %2065 = vmatpush3.bf16.msra.mxu1 %v2330_v18  ;;  %2074 = vmatprep.subr.bf16.mxu0 %v2331_v53 }
  0xe0   : > { %2157 = vmatprep.subr.bf16.mxu1 %v2156_v28 }
  0xe1   : > { %2047 = vmatmul.mubr.bf16.vlgmr.msra.gmra.mrb[0].mxu0 %v640_v25 }
  0xe2   : > { %2090 = vmatprep.mubr.bf16.mxu0 %v649_v14  ;;  %2067 = vmatmul.mubr.bf16.vlgmr.msra.gmra.mrb[0].mxu1 %v3080_v31 }
  0xe3   : > { %2070 = vmatprep.mubr.bf16.mxu1 %v3082_v32  ;;  %2159 = vmatpush3.bf16.msra.mxu1 %v2156_v28 }
  0xe4   : > { %2161 = vmatprep.subr.bf16.mxu1 %v2160_v33  ;;  %2075 = vmatpush3.bf16.msra.mxu0 %v2331_v53 }
  0xe7   : > { %2163 = vmatpush3.bf16.msra.mxu1 %v2160_v33 }
  0xe8   : > { %2165 = vmatprep.subr.bf16.mxu1 %v2164_v38 }
  0xea   : > { %2071 = vmatmul.mubr.bf16.gmra.mrb[4].mxu1 %v3100_v41 }
  0xeb   : > { %2167 = vmatpush3.bf16.msra.mxu1 %v2164_v38 }
  0xec   : > { %2169 = vmatprep.subr.bf16.mxu1 %v2168_v42 }
  0xef   : > { %2171 = vmatpush3.bf16.msra.mxu1 %v2168_v42 }
  0xf0   : > { %2173 = vmatprep.subr.bf16.mxu1 %v2172_v45 }
  0xf3   : > { %2175 = vmatpush3.bf16.msra.mxu1 %v2172_v45 }
  0xf4   : > { %2177 = vmatprep.subr.bf16.mxu1 %v2176_v48 }
  0xf7   : > { %2179 = vmatpush3.bf16.msra.mxu1 %v2176_v48 }
  0xf8   : > { %2181 = vmatprep.subr.bf16.mxu1 %v2180_v51 }
  0xfb   : > { %2183 = vmatpush3.bf16.msra.mxu1 %v2180_v51 }
  0xfc   : > { %2185 = vmatprep.subr.bf16.mxu1 %v2184_v54 }
  0xff   : > { %2187 = vmatpush3.bf16.msra.mxu1 %v2184_v54  ;;  %v2332_v54 = vld [vmem:[%s3030_s9 + $0x8] sm:$0xff]  }
 0x100   : > { %2076 = vmatprep.subr.bf16.mxu0 %v2332_v54 }
 0x101   : > { %2077 = vmatpush3.bf16.msra.mxu0 %v2332_v54 }
 0x102   : > { %2078 = vmatprep.subr.bf16.mxu0 %v2333_v55 }
 0x105   : > { %2079 = vmatpush3.bf16.msra.mxu0 %v2333_v55 }
 0x106   : > { %2080 = vmatprep.subr.bf16.mxu0 %v2334_v56 }
 0x109   : > { %2081 = vmatpush3.bf16.msra.mxu0 %v2334_v56 }
 0x10a   : > { %2082 = vmatprep.subr.bf16.mxu0 %v2335_v57 }
 0x10d   : > { %2083 = vmatpush3.bf16.msra.mxu0 %v2335_v57 }
 0x10e   : > { %2084 = vmatprep.subr.bf16.mxu0 %v2336_v58 }
 0x111   : > { %2085 = vmatpush3.bf16.msra.mxu0 %v2336_v58 }
 0x112   : > { %2086 = vmatprep.subr.bf16.mxu0 %v2337_v59 }
 0x115   : > { %2087 = vmatpush3.bf16.msra.mxu0 %v2337_v59 }
 0x1b4   : > { %v758_v62 = vpop.f32.mrb[0].mxu0 }
 0x1b5   : > { %v759_v63 = vadd.f32 %v1921_v60, %v758_v62  ;;  %v2048_v0 = vpop.f32.mrb[1].mxu0  ;;  %v2068_v2 = vpop.f32.mrb[0].mxu1  ;;  %v2338_v60 = vld [vmem:[%s3030_s9 + $0x38] sm:$0xff]   ;;  %s1918_s9 = sshll.u32 %s3390_s14, 3 }
 0x1b6   : > { %v761_v1 = vpop.f32.mrb[2].mxu0  ;;  %v869_v7 = vpop.f32.mrb[1].mxu1  ;;  %v878_v19 = vadd.f32 %v2068_v2, %v1930_v5  ;;  %2088 = vmatprep.subr.bf16.mxu0 %v2338_v60  ;;  %p3180_p12 = scmp.lt.s32.totalorder %s1918_s9, 15 }
 0x1b7   : > { %v1037_v3 = vcombine.high %v759_v63, %v759_v63  ;;  %v1044_v4 = vrot.slane %v759_v63, %v1043_v61  ;;  %v2049_v6 = vpop.f32.mrb[3].mxu0  ;;  %v2069_v9 = vpop.f32.mrb[2].mxu1  ;;  %v870_v14 = vadd.f32 %v1930_v5, %v869_v7  ;;  %2089 = vmatpush3.bf16.msra.mxu0 %v2338_v60 }
 0x1b8   : > { %v872_v13 = vpop.f32.mrb[3].mxu1  ;;  %v881_v27 = vadd.f32 %v2069_v9, %v1930_v5  ;;  %s3424_s9 = smov (!%p3180_p12, %s1918_s9), 15 }
 0x1b9   : > { %v1051_v10 = vrot.slane %v1037_v3, %v1043_v61  ;;  %v1052_v11 = vcombine.high %v1044_v4, %v1044_v4  ;;  %v1060_v12 = vrot.slane %v1044_v4, %v1043_v61  ;;  %v873_v21 = vadd.f32 %v1930_v5, %v872_v13  ;;  %s634_s5 = sadd.s32 %s1919_s16, %s3424_s9  ;;  %s1915_s9 = sshll.u32 %s3010_s29, 3 }
 0x1ba   : > { %2091 = vmatmul.mubr.bf16.vlgmr.msra.gmra.mrb[4].mxu0 %v3080_v31  ;;  %s1920_s10 = sshll.u32 %s634_s5, 3  ;;  %s3399_s16 = sld [smem:[#allocation24_spill]] }
 0x1bb   : > { %v1053_v15 = vcombine.high %v1051_v10, %v1051_v10  ;;  %v1067_v16 = vrot.slane %v1051_v10, %v1043_v61  ;;  %v1074_v17 = vrot.slane %v1052_v11, %v1043_v61  ;;  %v1082_v18 = vcombine.high %v1060_v12, %v1060_v12  ;;  %2094 = vmatprep.mubr.bf16.mxu0 %v3082_v32  ;;  %s3197_s7 = scalar_lea.vmem %s3397_s0, %s1920_s10  ;;  %s3400_s0 = sld [smem:[#allocation33_spill]] }
 0x1bc   : > { %v1089_v20 = vrot.slane %v1060_v12, %v1088_v8 }
 0x1bd   : > { %v1097_v22 = vrot.slane %v1082_v18, %v1088_v8  ;;  %v1084_v23 = vcombine.high %v1074_v17, %v1074_v17  ;;  %v1093_v24 = vrot.slane %v1074_v17, %v1088_v8  ;;  %v1083_v25 = vcombine.high %v1067_v16, %v1067_v16  ;;  %v2072_v28 = vpop.f32.mrb[4].mxu1 }
 0x1be   : > { %v1126_v26 = vmul.f32 %v1089_v20, %v870_v14  ;;  %v1081_v29 = vrot.slane %v1053_v15, %v1043_v61  ;;  %v894_v35 = vadd.f32 %v2072_v28, %v1930_v5  ;;  %v885_v36 = vpop.f32.mrb[5].mxu1  ;;  %v1105_v39 = vrot.slane %v1067_v16, %v1088_v8  ;;  %v1408_v61 = vld [vmem:[%s3395_s13] sm:$0xf]  ;;  %s627_s13 = scalar_lea.vmem %s3398_s11, %s3045_s18  ;;  %s2190_s18 = smul.u32 3, %s3390_s14 }
 0x1bf   : > { %v1128_v30 = vmul.f32 %v1097_v22, %v878_v19  ;;  %v1101_v33 = vrot.slane %v1084_v23, %v1088_v8  ;;  %v1127_v34 = vmul.f32 %v1093_v24, %v873_v21  ;;  %v1113_v37 = vrot.slane %v1083_v25, %v1088_v8  ;;  %v2073_v40 = vpop.f32.mrb[6].mxu1  ;;  %2142 = vmatprep.subr.msk.mxu0 %vm1433_vm1, %v1408_v61  ;;  %s609_s14 = scalar_lea.vmem [#allocation10], %s1915_s9  ;;  %s2495_s11 = sshll.u32 %s2634_s12, 4  ;;  %s2496_s11 = int_to_ptr.vmem [resolvable:$false] %s2495_s11 }
 0x1c0   : > { %v886_v38 = vadd.f32 %v1930_v5, %v885_v36  ;;  %v1085_v42 = vcombine.high %v1081_v29, %v1081_v29  ;;  %2130 = vmatprep.mubr.f32.mxu1 %v1126_v26  ;;  %v897_v44 = vadd.f32 %v2073_v40, %v1930_v5  ;;  %v888_v45 = vpop.f32.mrb[7].mxu1  ;;  %v1109_v46 = vrot.slane %v1081_v29, %v1088_v8  ;;  %s1655_s15 = sadd.s32 %s3389_s8, %s2190_s18  ;;  %s1659_s10 = sshll.u32 %s609_s14, 4  ;;  %s3242_s10 = int_to_ptr.vmem [resolvable:$true] %s1659_s10 }
 0x1c1   : > { %v1129_v43 = vmul.f32 %v1101_v33, %v881_v27  ;;  %2131 = vmatmul.mubr.f32.vlgmr.msra.gmra.mrb[8].mxu1 %v1127_v34  ;;  %v1132_v47 = vmul.f32 %v1113_v37, %v894_v35  ;;  %v889_v50 = vadd.f32 %v1930_v5, %v888_v45  ;;  %2188 = vmatprep.subr.msk.mxu1 %vm1433_vm1, %v1408_v61  ;;  %s1958_s5 = sshll.u32 %s1655_s15, 7  ;;  %s1640_s8 = scalar_lea.sflag [#allocation4], %s3010_s29 }
 0x1c2   : > { %v1130_v48 = vmul.f32 %v1105_v39, %v886_v38  ;;  %v1117_v49 = vrot.slane %v1085_v42, %v1088_v8  ;;  %2133 = vmatprep.mubr.f32.mxu1 %v1128_v30  ;;  %2095 = vmatmul.mubr.bf16.gmra.mrb[8].mxu0 %v3100_v41  ;;  %s2491_s3 = scalar_lea.vmem %s3242_s10, 128  ;;  %p3401_p5 = scmp.ne.s32.totalorder %s3399_s16, 0 }
 0x1c3   : > { %v1131_v52 = vmul.f32 %v1109_v46, %v889_v50  ;;  %2143 = vmatpush3.msk.msra.mxu0 %vm1433_vm1, %v1408_v61  ;;  %2189 = vmatpush3.msk.msra.mxu1 %vm1433_vm1, %v1408_v61  ;;  %p2492_p9 = scmp.ne.s32.totalorder %s3242_s10, %s2491_s3  ;;  %p2498_p0 = scmp.lt.s32.totalorder %s3242_s10, %s2496_s11 }
 0x1c4   : > { %v1133_v51 = vmul.f32 %v1117_v49, %v897_v44 }
 0x1c5   : > { %2134 = vmatmul.mubr.f32.gmra.mrb[10].mxu1 %v1129_v43  ;;  %p2493_p3 = pnand %p2492_p9, %p3401_p5 }
 0x1c6   : > { %2136 = vmatprep.mubr.f32.mxu1 %v1130_v48 }
 0x1c7   : > { %p2494_p2 = pneg %p2493_p3 }
 0x1c9   : > { %2137 = vmatmul.mubr.f32.gmra.mrb[12].mxu1 %v1131_v52 }
 0x1ca   : > { %2139 = vmatprep.mubr.f32.mxu1 %v1132_v47 }
 0x1cd   : > { %2140 = vmatmul.mubr.f32.gmra.mrb[14].mxu1 %v1133_v51 }
 0x294   : > { %v2132_v62 = vpop.f32.mrb[8].mxu1 }
 0x295   : > { %v1263_v63 = vsel %vm1255_vm2, %v2132_v62, -inf  ;;  %v1216_v0 = vpop.f32.mrb[9].mxu1 }
 0x296   : > { %v1264_v1 = vrot.slane %v1263_v63, 4  ;;  %v1256_v31 = vsel %vm1255_vm2, %v1216_v0, -inf }
 0x297   : > { %v1257_v32 = vrot.slane %v1256_v31, 4 }
 0x298   : > { %v1265_v2 = vmax.f32 %v1263_v63, %v1264_v1  ;;  %v2135_v41 = vpop.f32.mrb[10].mxu1 }
 0x299   : > { %v1258_v3 = vmax.f32 %v1256_v31, %v1257_v32  ;;  %v1277_v4 = vsel %vm1255_vm2, %v2135_v41, -inf  ;;  %v1226_v5 = vpop.f32.mrb[11].mxu1 }
 0x29a   : > { %v1266_v6 = vrot.slane %v1265_v2, 2  ;;  %v1278_v7 = vrot.slane %v1277_v4, 4  ;;  %v1270_v8 = vsel %vm1255_vm2, %v1226_v5, -inf }
 0x29b   : > { %v1259_v9 = vrot.slane %v1258_v3, 2  ;;  %v1271_v10 = vrot.slane %v1270_v8, 4 }
 0x29c   : > { %v1267_v11 = vmax.f32 %v1265_v2, %v1266_v6  ;;  %v1279_v12 = vmax.f32 %v1277_v4, %v1278_v7  ;;  %v2138_v13 = vpop.f32.mrb[12].mxu1 }
 0x29d   : > { %v1260_v14 = vmax.f32 %v1258_v3, %v1259_v9  ;;  %v1272_v15 = vmax.f32 %v1270_v8, %v1271_v10  ;;  %v1291_v16 = vsel %vm1255_vm2, %v2138_v13, -inf  ;;  %v1236_v17 = vpop.f32.mrb[13].mxu1 }
 0x29e   : > { %v1268_v18 = vrot.slane %v1267_v11, 1  ;;  %v1280_v19 = vrot.slane %v1279_v12, 2  ;;  %v1292_v20 = vrot.slane %v1291_v16, 4  ;;  %v1284_v21 = vsel %vm1255_vm2, %v1236_v17, -inf }
 0x29f   : > { %v1261_v22 = vrot.slane %v1260_v14, 1  ;;  %v1273_v23 = vrot.slane %v1272_v15, 2  ;;  %v1285_v24 = vrot.slane %v1284_v21, 4 }
 0x2a0   : > { %v1269_v25 = vmax.f32 %v1267_v11, %v1268_v18  ;;  %v1281_v26 = vmax.f32 %v1279_v12, %v1280_v19  ;;  %v1293_v27 = vmax.f32 %v1291_v16, %v1292_v20  ;;  %v2141_v28 = vpop.f32.mrb[14].mxu1 }
 0x2a1   : > { %v1262_v29 = vmax.f32 %v1260_v14, %v1261_v22  ;;  %v1274_v30 = vmax.f32 %v1272_v15, %v1273_v23  ;;  %v1286_v33 = vmax.f32 %v1284_v21, %v1285_v24  ;;  %v1305_v34 = vsel %vm1255_vm2, %v2141_v28, -inf  ;;  %v1246_v35 = vpop.f32.mrb[15].mxu1 }
 0x2a2   : > { %v1313_v36 = vsub.f32 %v2132_v62, %v1269_v25  ;;  %v1282_v37 = vrot.slane %v1281_v26, 1  ;;  %v1294_v38 = vrot.slane %v1293_v27, 2  ;;  %v1306_v39 = vrot.slane %v1305_v34, 4 }
 0x2a3   : > { %v1312_v40 = vsub.f32 %v1216_v0, %v1262_v29  ;;  %v1275_v42 = vrot.slane %v1274_v30, 1  ;;  %v1287_v43 = vrot.slane %v1286_v33, 2  ;;  %v1298_v44 = vsel %vm1255_vm2, %v1246_v35, -inf }
 0x2a4   : > { %v1322_v45 = vmul.f32 1.442695, %v1313_v36  ;;  %v1283_v46 = vmax.f32 %v1281_v26, %v1282_v37  ;;  %v1295_v47 = vmax.f32 %v1293_v27, %v1294_v38  ;;  %v1307_v48 = vmax.f32 %v1305_v34, %v1306_v39 }
 0x2a5   : > { %v1320_v49 = vmul.f32 1.442695, %v1312_v40  ;;  %v1276_v50 = vmax.f32 %v1274_v30, %v1275_v42  ;;  %v1288_v51 = vmax.f32 %v1286_v33, %v1287_v43  ;;  %v1299_v52 = vrot.slane %v1298_v44, 4 }
 0x2a6   : > { %2339 = vpow2.f32 %v1322_v45  ;;  %v1315_v53 = vsub.f32 %v2135_v41, %v1283_v46  ;;  %v1296_v54 = vrot.slane %v1295_v47, 1  ;;  %v1308_v55 = vrot.slane %v1307_v48, 2 }
 0x2a7   : > { %2341 = vpow2.f32 %v1320_v49  ;;  %v1314_v56 = vsub.f32 %v1226_v5, %v1276_v50  ;;  %v1289_v57 = vrot.slane %v1288_v51, 1  ;;  %v1300_v58 = vmax.f32 %v1298_v44, %v1299_v52 }
 0x2a8   : > { %v1326_v59 = vmul.f32 1.442695, %v1315_v53  ;;  %v1297_v60 = vmax.f32 %v1295_v47, %v1296_v54  ;;  %v1309_v61 = vmax.f32 %v1307_v48, %v1308_v55 }
 0x2a9   : > { %v1324_v62 = vmul.f32 1.442695, %v1314_v56  ;;  %v1290_v63 = vmax.f32 %v1288_v51, %v1289_v57  ;;  %v1301_v0 = vrot.slane %v1300_v58, 2 }
 0x2aa   : > { %2343 = vpow2.f32 %v1326_v59  ;;  %v1317_v1 = vsub.f32 %v2138_v13, %v1297_v60  ;;  %v1310_v31 = vrot.slane %v1309_v61, 1 }
 0x2ab   : > { %2345 = vpow2.f32 %v1324_v62  ;;  %v1316_v32 = vsub.f32 %v1236_v17, %v1290_v63  ;;  %v1302_v2 = vmax.f32 %v1300_v58, %v1301_v0 }
 0x2ac   : > { %v1330_v3 = vmul.f32 1.442695, %v1317_v1  ;;  %v1311_v41 = vmax.f32 %v1309_v61, %v1310_v31 }
 0x2ad   : > { %v1328_v4 = vmul.f32 1.442695, %v1316_v32  ;;  %v1303_v6 = vrot.slane %v1302_v2, 1 }
 0x2ae   : > { %2347 = vpow2.f32 %v1330_v3  ;;  %v1319_v5 = vsub.f32 %v2141_v28, %v1311_v41 }
 0x2af   : > { %2349 = vpow2.f32 %v1328_v4  ;;  %v1304_v7 = vmax.f32 %v1302_v2, %v1303_v6 }
 0x2b0   : > { %v3157_v8 = vpop.eup %2339  ;;  %v1334_v9 = vmul.f32 1.442695, %v1319_v5 }
 0x2b1   : > { %v3159_v10 = vpop.eup %2341  ;;  %v1343_v11 = vsel %vm1255_vm2, %v3157_v8, 0.0  ;;  %v1318_v12 = vsub.f32 %v1246_v35, %v1304_v7 }
 0x2b2   : > { %v1344_v13 = vrot.slane %v1343_v11, 4  ;;  %v1336_v14 = vsel %vm1255_vm2, %v3159_v10, 0.0  ;;  %2351 = vpow2.f32 %v1334_v9 }
 0x2b3   : > { %v1337_v15 = vrot.slane %v1336_v14, 4  ;;  %v1332_v16 = vmul.f32 1.442695, %v1318_v12 }
 0x2b4   : > { %v3165_v17 = vpop.eup %2343  ;;  %v1345_v18 = vadd.f32 %v1344_v13, %v1343_v11 }
 0x2b5   : > { %v3167_v19 = vpop.eup %2345  ;;  %v1338_v20 = vadd.f32 %v1337_v15, %v1336_v14  ;;  %v1357_v21 = vsel %vm1255_vm2, %v3165_v17, 0.0  ;;  %2353 = vpow2.f32 %v1332_v16 }
 0x2b6   : > { %v1346_v22 = vrot.slane %v1345_v18, 2  ;;  %v1358_v23 = vrot.slane %v1357_v21, 4  ;;  %v1350_v24 = vsel %vm1255_vm2, %v3167_v19, 0.0 }
 0x2b7   : > { %v1339_v25 = vrot.slane %v1338_v20, 2  ;;  %v1351_v26 = vrot.slane %v1350_v24, 4 }
 0x2b8   : > { %v3174_v27 = vpop.eup %2347  ;;  %v1347_v28 = vadd.f32 %v1346_v22, %v1345_v18  ;;  %v1359_v29 = vadd.f32 %v1358_v23, %v1357_v21 }
 0x2b9   : > { %v3176_v30 = vpop.eup %2349  ;;  %v1340_v33 = vadd.f32 %v1339_v25, %v1338_v20  ;;  %v1352_v34 = vadd.f32 %v1351_v26, %v1350_v24  ;;  %v1371_v35 = vsel %vm1255_vm2, %v3174_v27, 0.0 }
 0x2ba   : > { %v1348_v36 = vrot.slane %v1347_v28, 1  ;;  %v1360_v37 = vrot.slane %v1359_v29, 2  ;;  %v1372_v38 = vrot.slane %v1371_v35, 4  ;;  %v1364_v39 = vsel %vm1255_vm2, %v3176_v30, 0.0 }
 0x2bb   : > { %v1341_v40 = vrot.slane %v1340_v33, 1  ;;  %v1353_v42 = vrot.slane %v1352_v34, 2  ;;  %v1365_v43 = vrot.slane %v1364_v39, 4 }
 0x2bc   : > { %v3186_v44 = vpop.eup %2351  ;;  %v1349_v45 = vadd.f32 %v1348_v36, %v1347_v28  ;;  %v1361_v46 = vadd.f32 %v1360_v37, %v1359_v29  ;;  %v1373_v47 = vadd.f32 %v1372_v38, %v1371_v35  ;;  %v1939_v37 = vld [vmem:[%s627_s13] ss:$0 sm:$0xff]  ;;  %s2497_s13 = scalar_lea.vmem %s2496_s11, 256 }
 0x2bd   : > { %v1342_v48 = vadd.f32 %v1341_v40, %v1340_v33  ;;  %v1354_v49 = vadd.f32 %v1353_v42, %v1352_v34  ;;  %v1366_v50 = vadd.f32 %v1365_v43, %v1364_v39  ;;  %v1385_v51 = vsel %vm1255_vm2, %v3186_v44, 0.0  ;;  %p2499_p10 = scmp.lt.s32.totalorder %s2497_s13, %s2491_s3 }
 0x2be   : > { %2355 = vrcp.f32 %v1349_v45  ;;  %v1362_v52 = vrot.slane %v1361_v46, 1  ;;  %v1374_v53 = vrot.slane %v1373_v47, 2  ;;  %v1386_v54 = vrot.slane %v1385_v51, 4 }
 0x2bf   : > { %v2354_v55 = vpop.eup %2353  ;;  %v1355_v56 = vrot.slane %v1354_v49, 1  ;;  %v1367_v57 = vrot.slane %v1366_v50, 2  ;;  %2357 = vrcp.f32 %v1342_v48  ;;  %p2500_p4 = por %p2499_p10, %p2498_p0 }
 0x2c0   : > { %v1363_v58 = vadd.f32 %v1362_v52, %v1361_v46  ;;  %v1375_v59 = vadd.f32 %v1374_v53, %v1373_v47  ;;  %v1387_v60 = vadd.f32 %v1386_v54, %v1385_v51  ;;  %v1378_v61 = vsel %vm1255_vm2, %v2354_v55, 0.0 }
 0x2c1   : > { %v1356_v62 = vadd.f32 %v1355_v56, %v1354_v49  ;;  %v1368_v63 = vadd.f32 %v1367_v57, %v1366_v50  ;;  %v1379_v0 = vrot.slane %v1378_v61, 4  ;;  %p2501_p6 = pnand %p2500_p4, %p2494_p2 }
 0x2c2   : > { %v1376_v1 = vrot.slane %v1375_v59, 1  ;;  %v1388_v31 = vrot.slane %v1387_v60, 2  ;;  %2359 = vrcp.f32 %v1363_v58 }
 0x2c3   : > { %v1369_v32 = vrot.slane %v1368_v63, 1  ;;  %v1380_v2 = vadd.f32 %v1379_v0, %v1378_v61  ;;  %2361 = vrcp.f32 %v1356_v62 }
 0x2c4   : > { %v1377_v3 = vadd.f32 %v1376_v1, %v1375_v59  ;;  %v1389_v41 = vadd.f32 %v1388_v31, %v1387_v60 }
 0x2c5   : > { %v1370_v4 = vadd.f32 %v1369_v32, %v1368_v63  ;;  %v1381_v6 = vrot.slane %v1380_v2, 2 }
 0x2c6   : > { %2363 = vrcp.f32 %v1377_v3  ;;  %v1390_v5 = vrot.slane %v1389_v41, 1 }
 0x2c7   : > { %v1382_v7 = vadd.f32 %v1381_v6, %v1380_v2  ;;  %2365 = vrcp.f32 %v1370_v4 }
 0x2c8   : > { %v2356_v9 = vpop.eup %2355  ;;  %v1391_v11 = vadd.f32 %v1390_v5, %v1389_v41 }
 0x2c9   : > { %v2358_v12 = vpop.eup %2357  ;;  %v1395_v13 = vmul.f32 %v2356_v9, %v3157_v8  ;;  %v1383_v14 = vrot.slane %v1382_v7, 1 }
 0x2ca   : > { %v1393_v15 = vmul.f32 %v2358_v12, %v3159_v10  ;;  %2367 = vrcp.f32 %v1391_v11 }
 0x2cb   : > { %1599 = vst.msk [vmem:[%s3197_s7 + $0x8] sm:$0xff] %vm1255_vm2, %v1395_v13  ;;  %v1384_v16 = vadd.f32 %v1383_v14, %v1382_v7 }
 0x2cc   : > { %v2360_v18 = vpop.eup %2359  ;;  %2144 = vmatprep.mubr.msk.f32.mxu0 %vm1255_vm2, %v1393_v15  ;;  %1598 = vst.msk [vmem:[%s3197_s7] sm:$0xff] %vm1255_vm2, %v1393_v15 }
 0x2cd   : > { %v2362_v20 = vpop.eup %2361  ;;  %2145 = vmatmul.mubr.msk.f32.vlgmr.msra.gmra.mrb[12].mxu0 %vm1255_vm2, %v1395_v13  ;;  %v1399_v8 = vmul.f32 %v2360_v18, %v3165_v17  ;;  %2369 = vrcp.f32 %v1384_v16 }
 0x2ce   : > { %v1397_v21 = vmul.f32 %v2362_v20, %v3167_v19 }
 0x2cf   : > { %1601 = vst.msk [vmem:[%s3197_s7 + $0x18] sm:$0xff] %vm1255_vm2, %v1399_v8 }
 0x2d0   : > { %v2364_v10 = vpop.eup %2363  ;;  %2147 = vmatprep.mubr.msk.f32.mxu0 %vm1255_vm2, %v1397_v21  ;;  %1600 = vst.msk [vmem:[%s3197_s7 + $0x10] sm:$0xff] %vm1255_vm2, %v1397_v21 }
 0x2d1   : > { %v2366_v22 = vpop.eup %2365  ;;  %v1403_v23 = vmul.f32 %v2364_v10, %v3174_v27  ;;  %2148 = vmatmul.mubr.msk.f32.gmra.mrb[14].mxu0 %vm1255_vm2, %v1399_v8  ;;  %v2092_v27 = vpop.f32.mrb[4].mxu0 }
 0x2d2   : > { %v1401_v24 = vmul.f32 %v2366_v22, %v3176_v30  ;;  %v1005_v28 = vpop.f32.mrb[5].mxu0  ;;  %v1014_v47 = vadd.f32 %v2092_v27, %v1939_v37 }
 0x2d3   : > { %1603 = vst.msk [vmem:[%s3197_s7 + $0x28] sm:$0xff] %vm1255_vm2, %v1403_v23  ;;  %v2093_v29 = vpop.f32.mrb[6].mxu0  ;;  %v1006_v39 = vadd.f32 %v1939_v37, %v1005_v28 }
 0x2d4   : > { %v2368_v17 = vpop.eup %2367  ;;  %2150 = vmatprep.mubr.msk.f32.mxu1 %vm1255_vm2, %v1401_v24  ;;  %1602 = vst.msk [vmem:[%s3197_s7 + $0x20] sm:$0xff] %vm1255_vm2, %v1401_v24  ;;  %v1008_v30 = vpop.f32.mrb[7].mxu0  ;;  %v1017_v45 = vadd.f32 %v2093_v29, %v1939_v37 }
 0x2d5   : > { %2151 = vmatmul.mubr.msk.f32.vlgmr.msra.gmra.mrb[16].mxu1 %vm1255_vm2, %v1403_v23  ;;  %v1407_v19 = vmul.f32 %v2368_v17, %v3186_v44  ;;  %v2096_v33 = vpop.f32.mrb[8].mxu0  ;;  %v1009_v38 = vadd.f32 %v1939_v37, %v1008_v30 }
 0x2d6   : > { %v1021_v34 = vpop.f32.mrb[9].mxu0  ;;  %v1030_v14 = vadd.f32 %v2096_v33, %v1939_v37 }
 0x2d7   : > { %v2370_v25 = vpop.eup %2369  ;;  %1605 = vst.msk [vmem:[%s3197_s7 + $0x38] sm:$0xff] %vm1255_vm2, %v1407_v19  ;;  %v2097_v35 = vpop.f32.mrb[10].mxu0  ;;  %v1022_v58 = vadd.f32 %v1939_v37, %v1021_v34 }
 0x2d8   : > { %v1405_v26 = vmul.f32 %v2370_v25, %v2354_v55  ;;  %v1024_v36 = vpop.f32.mrb[11].mxu0  ;;  %v1033_v6 = vadd.f32 %v2097_v35, %v1939_v37 }
 0x2d9   : > { %v1025_v55 = vadd.f32 %v1939_v37, %v1024_v36 }
 0x2da   : > { %2153 = vmatprep.mubr.msk.f32.mxu1 %vm1255_vm2, %v1405_v26  ;;  %1604 = vst.msk [vmem:[%s3197_s7 + $0x30] sm:$0xff] %vm1255_vm2, %v1405_v26  ;;  %s3240_s7 = scalar_lea.hbm %s3400_s0, %s1958_s5 }
 0x2db   : > { %2154 = vmatmul.mubr.msk.f32.gmra.mrb[18].mxu1 %vm1255_vm2, %v1407_v19 }
 0x3a0   : > { %v2146_v40 = vpop.f32.mrb[12].mxu0 }
 0x3a1   : > { %v1543_v42 = vmul.f32 %v2146_v40, %v1009_v38  ;;  %v1503_v43 = vpop.f32.mrb[13].mxu0 }
 0x3a2   : > { %v1542_v44 = vmul.f32 %v1503_v43, %v1006_v39 }
 0x3a3   : > { %v1556_v46 = vrot.slane %v1543_v42, 4 }
 0x3a4   : > { %v1550_v48 = vrot.slane %v1542_v44, 4  ;;  %v2149_v49 = vpop.f32.mrb[14].mxu0 }
 0x3a5   : > { %v1557_v50 = vadd.f32 %v1556_v46, %v1543_v42  ;;  %v1545_v51 = vmul.f32 %v2149_v49, %v1017_v45  ;;  %v1513_v52 = vpop.f32.mrb[15].mxu0 }
 0x3a6   : > { %v1551_v53 = vadd.f32 %v1550_v48, %v1542_v44  ;;  %v1544_v54 = vmul.f32 %v1513_v52, %v1014_v47 }
 0x3a7   : > { %v1558_v56 = vrot.slane %v1557_v50, 2  ;;  %v1568_v57 = vrot.slane %v1545_v51, 4 }
 0x3a8   : > { %v1552_v59 = vrot.slane %v1551_v53, 2  ;;  %v1562_v60 = vrot.slane %v1544_v54, 4  ;;  %v2152_v61 = vpop.f32.mrb[16].mxu1 }
 0x3a9   : > { %v1559_v62 = vadd.f32 %v1558_v56, %v1557_v50  ;;  %v1569_v63 = vadd.f32 %v1568_v57, %v1545_v51  ;;  %v1547_v0 = vmul.f32 %v2152_v61, %v1025_v55  ;;  %v1523_v1 = vpop.f32.mrb[17].mxu1 }
 0x3aa   : > { %v1553_v31 = vadd.f32 %v1552_v59, %v1551_v53  ;;  %v1563_v32 = vadd.f32 %v1562_v60, %v1544_v54  ;;  %v1546_v2 = vmul.f32 %v1523_v1, %v1022_v58 }
 0x3ab   : > { %v1560_v3 = vrot.slane %v1559_v62, 1  ;;  %v1570_v41 = vrot.slane %v1569_v63, 2  ;;  %v1580_v4 = vrot.slane %v1547_v0, 4 }
 0x3ac   : > { %v1554_v5 = vrot.slane %v1553_v31, 1  ;;  %v1564_v7 = vrot.slane %v1563_v32, 2  ;;  %v1574_v9 = vrot.slane %v1546_v2, 4 }
 0x3ad   : > { %v1561_v11 = vadd.f32 %v1560_v3, %v1559_v62  ;;  %v1571_v12 = vadd.f32 %v1570_v41, %v1569_v63  ;;  %v1581_v13 = vadd.f32 %v1580_v4, %v1547_v0 }
 0x3ae   : > { %v1555_v15 = vadd.f32 %v1554_v5, %v1553_v31  ;;  %v1565_v16 = vadd.f32 %v1564_v7, %v1563_v32  ;;  %v1575_v18 = vadd.f32 %v1574_v9, %v1546_v2  ;;  %v2155_v20 = vpop.f32.mrb[18].mxu1 }
 0x3af   : > { %v1572_v8 = vrot.slane %v1571_v12, 1  ;;  %v1582_v21 = vrot.slane %v1581_v13, 2  ;;  %v1549_v10 = vmul.f32 %v2155_v20, %v1033_v6  ;;  %v1533_v22 = vpop.f32.mrb[19].mxu1 }
 0x3b0   : > { %v1615_v23 = vsel %vm1614_vm3, %v1561_v11, %v1555_v15  ;;  %v1566_v24 = vrot.slane %v1565_v16, 1  ;;  %v1576_v17 = vrot.slane %v1575_v18, 2  ;;  %v1548_v19 = vmul.f32 %v1533_v22, %v1030_v14 }
 0x3b1   : > { %v1583_v25 = vadd.f32 %v1582_v21, %v1581_v13  ;;  %v1592_v26 = vrot.slane %v1549_v10, 4  ;;  %v1573_v30 = vadd.f32 %v1572_v8, %v1571_v12 }
 0x3b2   : > { %v1567_v27 = vadd.f32 %v1566_v24, %v1565_v16  ;;  %v1577_v28 = vadd.f32 %v1576_v17, %v1575_v18  ;;  %v1586_v29 = vrot.slane %v1548_v19, 4 }
 0x3b3   : > { %v1584_v33 = vrot.slane %v1583_v25, 1  ;;  %v1593_v34 = vadd.f32 %v1592_v26, %v1549_v10 }
 0x3b4   : > { %v1617_v35 = vsel %vm1616_vm4, %v1567_v27, %v1615_v23  ;;  %v1578_v36 = vrot.slane %v1577_v28, 1  ;;  %v1587_v37 = vadd.f32 %v1586_v29, %v1548_v19 }
 0x3b5   : > { %v1619_v38 = vsel %vm1618_vm5, %v1573_v30, %v1617_v35  ;;  %v1594_v39 = vrot.slane %v1593_v34, 2  ;;  %v1585_v43 = vadd.f32 %v1584_v33, %v1583_v25 }
 0x3b6   : > { %v1579_v40 = vadd.f32 %v1578_v36, %v1577_v28  ;;  %v1588_v42 = vrot.slane %v1587_v37, 2 }
 0x3b7   : > { %v1595_v44 = vadd.f32 %v1594_v39, %v1593_v34 }
 0x3b8   : > { %v1621_v45 = vsel %vm1620_vm6, %v1579_v40, %v1619_v38  ;;  %v1589_v46 = vadd.f32 %v1588_v42, %v1587_v37 }
 0x3b9   : > { %v1596_v47 = vrot.slane %v1595_v44, 1  ;;  %v1623_v48 = vsel %vm1622_vm7, %v1585_v43, %v1621_v45 }
 0x3ba   : > { %v1590_v49 = vrot.slane %v1589_v46, 1 }
 0x3bb   : > { %v1597_v51 = vadd.f32 %v1596_v47, %v1595_v44 }
 0x3bc   : > { %v1591_v50 = vadd.f32 %v1590_v49, %v1589_v46 }
 0x3be   : > { %v1625_v52 = vsel %vm1624_vm8, %v1591_v50, %v1623_v48 }
 0x3bf   : > { %v1627_v53 = vsel %vm1626_vm9, %v1597_v51, %v1625_v52 }
 0x3c0   : > { %1629 = vst [vmem:[%s609_s14] sm:$0xff] %v1627_v53 }
 0x3c1   : > { %2504 = shalt.err (!%p2501_p6)
}
 0x3c2   : > { %s2505_s29 = scalar_lea.hbm %s3240_s7, 128  ;;  %s2509_s15 = scalar_lea.hbm %s3400_s0, 768 }
 0x3c3   : > { %p2506_p7 = scmp.ne.s32.totalorder %s3240_s7, %s2505_s29  ;;  %p2510_p13 = scmp.lt.u32.totalorder %s3240_s7, %s3400_s0 }
 0x3c4   : > { %p2511_p8 = scmp.lt.u32.totalorder %s2509_s15, %s2505_s29  ;;  %p2513_p9 = scmp.lt.u32.totalorder %s2505_s29, %s3240_s7 }
 0x3c5   : > { %p2507_p1 = pnand %p2506_p7, %p3401_p5 }
 0x3c6   : > { %p2512_p12 = por %p2511_p8, %p2510_p13 }
 0x3c7   : > { %p2508_p11 = pneg %p2507_p1 }
 0x3c8   : > { %p2514_p3 = por %p2513_p9, %p2512_p12 }
 0x3ca   : > { %p2515_p2 = pnand %p2514_p3, %p2508_p11 }
 0x3cc   : > { %2518 = shalt.err (!%p2515_p2)
}
 0x3cd   : > { %2199 = dma.vmem_to_hbm [thread:$0]  (%p3401_p5), %s3242_s10, 128, %s3240_s7, %s1640_s8  }
 0x3ce PF: > { %p2219_p0 = scmp.ge.s32.totalorder %s2621_s27, 2  ;;  %s1683_s28 = sand.u32 1, %s2593_s20  }
 0x3cf   : > { %p3402_p10 = scmp.ne.s32.totalorder %s3374_s2, 0  ;;  %s1684_s23 = scalar_lea.sflag [#allocation4], %s1683_s28 }
 0x3d1   : > { %p2215_p4 = pnand %p2219_p0, %p3402_p10 }
 0x3d3   : > { %2576 = dma.done.wait (!%p2215_p4), %s1684_s23, 128  }
 0x3d4   : > { %2578 = vsyncadd (!%p2215_p4), %s1684_s23, 4294967168  ;;  %s34_s27 = sadd.s32 1, %s2621_s27   ;;  %s3403_s3 = sld [smem:[#allocation15_spill]] }
 0x3d5   : > { %p31_p6 = scmp.ge.s32.totalorder %s34_s27, 8   ;;  %s3404_s16 = smov %s2880_s17 }
 0x3d6   : > { %s3405_s10 = sld [smem:[#allocation20_spill]]  ;;  %s3406_s7 = sld [smem:[#allocation21_spill]] }
 0x3d7   : > { %s3408_s18 = smov %s2589_s19  ;;  %s3409_s19 = smov %s2877_s24 }
 0x3d8   : > { %s3410_s20 = smov %s2597_s21  ;;  %s3411_s21 = smov %s2601_s22 }
 0x3d9   : > { %s3412_s22 = smov %s3404_s16  ;;  %s3413_s23 = smov %s2613_s25 }
 0x3da   : > { %s3407_s17 = smov %s3403_s3  ;;  %s3414_s24 = smov %s2617_s26 }
 0x3db   :  { %33 = sbr.rel (!%p31_p6) target bundleno = 23 (0x17), region = 166 }
 0x3dc   : > { %s3415_s25 = smov %s3405_s10  ;;  %s3416_s26 = smov %s3406_s7 }
 0x3e2   :  { %1689 = vsyncpa [#allocation3], 1 }
 0x3e3   :  { %1691 = vsyncpa [#allocation3 + $0x1], 1 }
 0x3e4   :  { %1692 = vsyncpa [#allocation6], 1 }
 0x3e5   :  { %1694 = vsyncpa [#allocation6 + $0x1], 1 }
 0x3e6   :  { %1695 = vsyncpa [#allocation9], 1 }
 0x3e7   :  { %1697 = vsyncpa [#allocation9 + $0x1], 1 }
 0x3e8   :  { %1698 = vsyncpa [#allocation4], 1 }
 0x3e9   :  { %1700 = vsyncpa [#allocation4 + $0x1], 1 }

</bundles_post_ra>
